<compile_context>
chip_gen: v7x
topology: tpu7x:2x2x1
jax: 0.10.0
libtpu: 0.0.40
codegen_flags: <defaults>
</compile_context>

<pallas_src>
import functools
import math

import jax
import jax.numpy as jnp
from jax import lax
from jax.experimental import pallas as pl
from jax.experimental.pallas import tpu as pltpu


def _mxu(a, b):
    return jnp.dot(a, b, preferred_element_type=jnp.float32)


# --------------------------- the fused kernel ---------------------------

def _encoder_kernel(x_ref, chan_ref, qinfo_ref, dft_ref, idfta_ref, idftb_ref,
                    gsum_ref, gsel_ref, krep_ref, ktgt_ref, ksum_ref,
                    out_ref, es_ref, rep_ref, *, n_layers, F, Fp, B, C):
    big = 1e30
    inv_c = 1.0 / float(C)

    x = x_ref[...]                          # (N, BC)  lane axis: b-major/c-minor
    dft = dft_ref[...]                      # (2Fp, N)  stacked [cos; -sin] (ortho)
    idft_a = idfta_ref[...]                 # (N, Fp)
    idft_b = idftb_ref[...]                 # (N, Fp)
    gsum = gsum_ref[...]                    # (BC, B)  sum-over-channels selector
    gsel = gsel_ref[...]                    # (B, BC)  broadcast-over-channels
    krep = krep_ref[...]                    # (B, B*B) source-column replicator
    ktgt = ktgt_ref[...]                    # (B, B*B) target-column tiler
    ksum = ksum_ref[...]                    # (B*B, B) reduce over source columns
    pad_row = lax.broadcasted_iota(jnp.int32, (Fp, B), 0) >= F

    # TODO(synk): for many layers switch this static unroll to lax.fori_loop with
    # dynamic chan_ref[l] / qinfo_ref indexing (n_layers=2 here, unroll is fine).
    for l in range(n_layers):
        r0 = 6 * l
        gamma = chan_ref[r0 + 0:r0 + 1, :]  # (1, BC) pre-broadcast per-channel
        beta = chan_ref[r0 + 1:r0 + 2, :]
        wr = chan_ref[r0 + 2:r0 + 3, :]
        wi = chan_ref[r0 + 3:r0 + 4, :]
        whr = chan_ref[r0 + 4:r0 + 5, :]
        whi = chan_ref[r0 + 5:r0 + 6, :]
        rank_lo = qinfo_ref[3 * l + 0]      # SMEM scalars (quantile ranks / frac)
        rank_hi = qinfo_ref[3 * l + 1]
        frac = qinfo_ref[3 * l + 2]

        # ---- LayerNorm over channels (factored group mean / var) ----
        mu = _mxu(_mxu(x, gsum) * inv_c, gsel)            # (N, BC)
        xc = x - mu
        var = _mxu(_mxu(xc * xc, gsum) * inv_c, gsel)     # biased var
        xn = xc * lax.rsqrt(var + 1e-5) * gamma + beta

        # ---- forward rDFT (norm='ortho') as one stacked matmul ----
        xri = _mxu(dft, xn)                               # (2Fp, BC)
        xr = xri[:Fp, :]                                  # tile-aligned splits
        xi = xri[Fp:, :]

        # ---- adaptive high-frequency mask, fully in-kernel ----
        e_fb = _mxu(xr * xr + xi * xi, gsum)              # (Fp, B) per-(freq,batch)
        e_m = jnp.where(pad_row, big, e_fb)               # pad rows excluded
        es_ref[...] = e_m
        # per-batch lower median (torch.median) via rank counting
        cnt_pb = jnp.zeros((Fp, B), jnp.float32)
        for f_ in range(F):
            cnt_pb += jnp.where(es_ref[f_:f_ + 1, :] <= e_m, 1.0, 0.0)
        k_med = float((F - 1) // 2 + 1)
        med = jnp.min(jnp.where(cnt_pb >= k_med, e_m, big), axis=0, keepdims=True)
        norm_e = jnp.where(pad_row, big, e_fb / (med + 1e-6))
        # global torch.quantile (linear interpolation over the flattened (B,F)
        # energies) via two rank selections; all-pairs counts are built with a
        # (Fp, B*B) lane expansion so no cross-lane gathers are needed.
        rep = _mxu(norm_e, krep)                          # rep[f, b'*B+b] = v[f,b']
        tgt = _mxu(norm_e, ktgt)                          # tgt[f, b'*B+b] = v[f,b]
        rep_ref[...] = rep
        acc = jnp.zeros_like(tgt)
        for f_ in range(F):
            acc += jnp.where(rep_ref[f_:f_ + 1, :] <= tgt, 1.0, 0.0)
        cnt_all = _mxu(acc, ksum)                         # (Fp, B) exact counts
        s_lo = jnp.min(jnp.where(cnt_all >= rank_lo, norm_e, big))
        s_hi = jnp.min(jnp.where(cnt_all >= rank_hi, norm_e, big))
        thr = s_lo + frac * (s_hi - s_lo)
        mask_fb = jnp.where(norm_e < thr, 1.0, 0.0)       # pad rows -> 0 (value=big)
        m_bc = _mxu(mask_fb, gsel)                        # (Fp, BC)

        # ---- complex spectral weighting + inverse rDFT (no concat) + residual ----
        wre = wr + m_bc * whr
        wie = wi + m_bc * whi
        yr = xr * wre - xi * wie
        yi = xr * wie + xi * wre
        x = x + _mxu(idft_a, yr) + _mxu(idft_b, yi)

    out_ref[...] = x


# --------------------- constant matrices (built once) ---------------------

def make_constants(N, B, C):
    F = N // 2 + 1
    Fp = (F + 7) // 8 * 8                 # pad spectrum rows to a sublane tile
    BC = B * C
    n = jnp.arange(N, dtype=jnp.float32)
    f = jnp.arange(F, dtype=jnp.float32)
    scale = 1.0 / math.sqrt(N)            # norm='ortho'
    ang = 2.0 * jnp.pi * f[:, None] * n[None, :] / N                # (F, N)
    zrow = jnp.zeros((Fp - F, N), jnp.float32)
    dft_cs = jnp.concatenate([jnp.cos(ang) * scale, zrow,
                              -jnp.sin(ang) * scale, zrow], axis=0)  # (2Fp, N)
    # inverse rDFT; imag parts of DC / Nyquist bins drop automatically via sin=0
    nyq = N // 2 if N % 2 == 0 else -1
    fk = jnp.arange(F)
    w = jnp.where((fk == 0) | (fk == nyq), 1.0, 2.0).astype(jnp.float32)
    ang_i = 2.0 * jnp.pi * n[:, None] * f[None, :] / N              # (N, F)
    zcol = jnp.zeros((N, Fp - F), jnp.float32)
    idft_a = jnp.concatenate([jnp.cos(ang_i) * w * scale, zcol], axis=1)   # (N, Fp)
    idft_b = jnp.concatenate([-jnp.sin(ang_i) * w * scale, zcol], axis=1)  # (N, Fp)
    # lane-axis helpers (b-major / c-minor)
    col_b = jnp.arange(BC) // C
    gsum = (col_b[:, None] == jnp.arange(B)[None, :]).astype(jnp.float32)  # (BC, B)
    gsel = gsum.T                                                           # (B, BC)
    lane = jnp.arange(B * B)
    krep = (jnp.arange(B)[:, None] == (lane[None, :] // B)).astype(jnp.float32)
    ktgt = (jnp.arange(B)[:, None] == (lane[None, :] % B)).astype(jnp.float32)
    ksum = ktgt.T                                                           # (B*B, B)
    return dict(dft_cs=dft_cs, idft_a=idft_a, idft_b=idft_b, gsum=gsum,
                gsel=gsel, krep=krep, ktgt=ktgt, ksum=ksum)


# ------------------------- forward pass wrapper -------------------------

def encoder_forward(x, params):
    N, B, C = x.shape
    F = N // 2 + 1
    Fp = (F + 7) // 8 * 8
    BC = B * C
    assert B * B <= 128, "rank-selection lane expansion assumes B*B <= 128"
    cst = params["const"]
    chan = params["chan"]                  # (L, 6, C)
    thr = params["threshold"]              # (L,)
    L = chan.shape[0]

    xf = x.astype(jnp.float32).reshape(N, BC)            # b-major / c-minor lanes
    # pre-broadcast per-channel params onto the BC lane axis (tiny, once)
    chan_bc = jnp.tile(chan.reshape(L * 6, C), (1, B))   # (L*6, BC)
    # quantile rank / interpolation scalars (param-only -> computed outside)
    m = float(B * F)
    pos = jnp.clip(thr, 0.0, 1.0) * (m - 1.0)
    i_lo = jnp.clip(jnp.floor(pos), 0.0, m - 1.0)
    qinfo = jnp.stack([i_lo + 1.0, i_lo + 2.0, pos - i_lo], axis=1).reshape(-1)

    kern = functools.partial(_encoder_kernel, n_layers=L, F=F, Fp=Fp, B=B, C=C)
    vm = pl.BlockSpec(memory_space=pltpu.MemorySpace.VMEM)
    sm = pl.BlockSpec(memory_space=pltpu.MemorySpace.SMEM)
    out = pl.pallas_call(
        kern,
        out_shape=jax.ShapeDtypeStruct((N, BC), jnp.float32),
        in_specs=[vm, vm, sm, vm, vm, vm, vm, vm, vm, vm, vm],
        out_specs=vm,
        scratch_shapes=[pltpu.VMEM((Fp, B), jnp.float32),
                        pltpu.VMEM((Fp, B * B), jnp.float32)],
    )(xf, chan_bc, qinfo, cst["dft_cs"], cst["idft_a"], cst["idft_b"],
      cst["gsum"], cst["gsel"], cst["krep"], cst["ktgt"], cst["ksum"])
    return out.reshape(N, B, C).astype(x.dtype)


# ---------------- params + pure-JAX reference (correctness check) ----------------

def init_params(key, N, B, C, n_layers):
    keys = jax.random.split(key, 5 * n_layers)
    chans, thrs, raw_layers = [], [], []
    for i in range(n_layers):
        kcw, kch, kth, kg, kb = keys[5 * i:5 * i + 5]
        cw = jax.random.normal(kcw, (C, 2), jnp.float32) * 0.02       # complex_weight
        cw_high = jax.random.normal(kch, (C, 2), jnp.float32) * 0.02  # complex_weight_high
        threshold = jax.random.uniform(kth, (), jnp.float32) * 0.5
        ln_gamma = 1.0 + 0.1 * jax.random.normal(kg, (C,), jnp.float32)
        ln_beta = 0.1 * jax.random.normal(kb, (C,), jnp.float32)
        chan = jnp.stack([ln_gamma, ln_beta, cw[:, 0], cw[:, 1],
                          cw_high[:, 0], cw_high[:, 1]], axis=0)      # (6, C)
        chans.append(chan)
        thrs.append(threshold)
        raw_layers.append(dict(ln_gamma=ln_gamma, ln_beta=ln_beta,
                               cw=cw, cw_high=cw_high, threshold=threshold))
    params = dict(const=make_constants(N, B, C),
                  chan=jnp.stack(chans, axis=0),       # (L, 6, C)
                  threshold=jnp.stack(thrs, axis=0))   # (L,)
    return params, raw_layers


def encoder_reference(x, raw_layers):
    """Pure-JAX mirror of the PyTorch Encoder.forward (tolerance check)."""
    N = x.shape[0]
    F = N // 2 + 1
    out = x.astype(jnp.float32)
    for lp in raw_layers:
        xb = jnp.transpose(out, (1, 0, 2))                       # (B, N, C)
        mean = jnp.mean(xb, axis=-1, keepdims=True)
        var = jnp.mean((xb - mean) ** 2, axis=-1, keepdims=True)
        xn = (xb - mean) / jnp.sqrt(var + 1e-5) * lp["ln_gamma"] + lp["ln_beta"]
        xfft = jnp.fft.rfft(xn, axis=1, norm="ortho")            # (B, F, C)
        weight = lp["cw"][:, 0] + 1j * lp["cw"][:, 1]
        xw = xfft * weight
        energy = jnp.sum(jnp.abs(xfft) ** 2, axis=-1)            # (B, F)
        med = jnp.sort(energy, axis=1)[:, (F - 1) // 2][:, None]  # torch lower median
        normalized = energy / (med + 1e-6)
        thr = jnp.quantile(normalized, lp["threshold"])          # linear interp
        mask = (normalized < thr).astype(jnp.float32)[:, :, None]
        w_high = lp["cw_high"][:, 0] + 1j * lp["cw_high"][:, 1]
        xw = xw + (xfft * mask) * w_high
        y = jnp.fft.irfft(xw, n=N, axis=1, norm="ortho")         # (B, N, C)
        out = out + jnp.transpose(y, (1, 0, 2))
    return out


if __name__ == "__main__":
    N, B, C = 16, 4, 32          # seq_len, batch, dim_model  (B*C = 128 lanes)
    n_layers = 2
    key = jax.random.PRNGKey(0)
    kx, kp = jax.random.split(key)
    x = jax.random.normal(kx, (N, B, C), dtype=jnp.float32)
    params, raw_layers = init_params(kp, N, B, C, n_layers)

    out = jax.jit(encoder_forward)(x, params)
    jax.block_until_ready(out)
    assert out.shape == (N, B, C) and out.dtype == jnp.float32

    ref = encoder_reference(x, raw_layers)
    err = float(jnp.max(jnp.abs(out - ref)))
    assert err < 5e-3, f"kernel vs pure-JAX reference mismatch: max abs err = {err}"
    print("KERNEL_OK")
</pallas_src>

<mosaic_0001>
module attributes {stable_mosaic.version = 11 : i64} {
  func.func @_encoder_kernel(%arg0: memref<16x128xf32, #tpu.memory_space<vmem>>, %arg1: memref<12x128xf32, #tpu.memory_space<vmem>>, %arg2: memref<6xf32, #tpu.memory_space<smem>>, %arg3: memref<32x16xf32, #tpu.memory_space<vmem>>, %arg4: memref<16x16xf32, #tpu.memory_space<vmem>>, %arg5: memref<16x16xf32, #tpu.memory_space<vmem>>, %arg6: memref<128x4xf32, #tpu.memory_space<vmem>>, %arg7: memref<4x128xf32, #tpu.memory_space<vmem>>, %arg8: memref<4x16xf32, #tpu.memory_space<vmem>>, %arg9: memref<4x16xf32, #tpu.memory_space<vmem>>, %arg10: memref<16x4xf32, #tpu.memory_space<vmem>>, %arg11: memref<16x128xf32, #tpu.memory_space<vmem>>, %arg12: memref<16x4xf32, #tpu.memory_space<vmem>>, %arg13: memref<16x16xf32, #tpu.memory_space<vmem>>) attributes {dimension_semantics = [], scalar_prefetch = 0 : i64, scratch_operands = 2 : i64, tpu.core_type = #tpu.core_type<tc>} {
    %c0 = arith.constant 0 : index
    %c0_0 = arith.constant 0 : index
    %0 = vector.load %arg0[%c0, %c0_0] : memref<16x128xf32, #tpu.memory_space<vmem>>, vector<16x128xf32>
    %c0_1 = arith.constant 0 : index
    %c0_2 = arith.constant 0 : index
    %1 = vector.load %arg3[%c0_1, %c0_2] : memref<32x16xf32, #tpu.memory_space<vmem>>, vector<32x16xf32>
    %c0_3 = arith.constant 0 : index
    %c0_4 = arith.constant 0 : index
    %2 = vector.load %arg4[%c0_3, %c0_4] : memref<16x16xf32, #tpu.memory_space<vmem>>, vector<16x16xf32>
    %c0_5 = arith.constant 0 : index
    %c0_6 = arith.constant 0 : index
    %3 = vector.load %arg5[%c0_5, %c0_6] : memref<16x16xf32, #tpu.memory_space<vmem>>, vector<16x16xf32>
    %c0_7 = arith.constant 0 : index
    %c0_8 = arith.constant 0 : index
    %4 = vector.load %arg6[%c0_7, %c0_8] : memref<128x4xf32, #tpu.memory_space<vmem>>, vector<128x4xf32>
    %c0_9 = arith.constant 0 : index
    %c0_10 = arith.constant 0 : index
    %5 = vector.load %arg7[%c0_9, %c0_10] : memref<4x128xf32, #tpu.memory_space<vmem>>, vector<4x128xf32>
    %c0_11 = arith.constant 0 : index
    %c0_12 = arith.constant 0 : index
    %6 = vector.load %arg8[%c0_11, %c0_12] : memref<4x16xf32, #tpu.memory_space<vmem>>, vector<4x16xf32>
    %c0_13 = arith.constant 0 : index
    %c0_14 = arith.constant 0 : index
    %7 = vector.load %arg9[%c0_13, %c0_14] : memref<4x16xf32, #tpu.memory_space<vmem>>, vector<4x16xf32>
    %c0_15 = arith.constant 0 : index
    %c0_16 = arith.constant 0 : index
    %8 = vector.load %arg10[%c0_15, %c0_16] : memref<16x4xf32, #tpu.memory_space<vmem>>, vector<16x4xf32>
    %9 = tpu.iota {dimensions = array<i32: 0>} : vector<16x4xi32>
    %c9_i32 = arith.constant 9 : i32
    %10 = vector.broadcast %c9_i32 : i32 to vector<16x4xi32>
    %11 = arith.cmpi sge, %9, %10 : vector<16x4xi32>
    %c0_17 = arith.constant 0 : index
    %c0_18 = arith.constant 0 : index
    %12 = vector.load %arg1[%c0_17, %c0_18] : memref<12x128xf32, #tpu.memory_space<vmem>>, vector<1x128xf32>
    %c1 = arith.constant 1 : index
    %c0_19 = arith.constant 0 : index
    %13 = vector.load %arg1[%c1, %c0_19] : memref<12x128xf32, #tpu.memory_space<vmem>>, vector<1x128xf32>
    %c2 = arith.constant 2 : index
    %c0_20 = arith.constant 0 : index
    %14 = vector.load %arg1[%c2, %c0_20] : memref<12x128xf32, #tpu.memory_space<vmem>>, vector<1x128xf32>
    %c3 = arith.constant 3 : index
    %c0_21 = arith.constant 0 : index
    %15 = vector.load %arg1[%c3, %c0_21] : memref<12x128xf32, #tpu.memory_space<vmem>>, vector<1x128xf32>
    %c4 = arith.constant 4 : index
    %c0_22 = arith.constant 0 : index
    %16 = vector.load %arg1[%c4, %c0_22] : memref<12x128xf32, #tpu.memory_space<vmem>>, vector<1x128xf32>
    %c5 = arith.constant 5 : index
    %c0_23 = arith.constant 0 : index
    %17 = vector.load %arg1[%c5, %c0_23] : memref<12x128xf32, #tpu.memory_space<vmem>>, vector<1x128xf32>
    %c0_24 = arith.constant 0 : index
    %18 = memref.load %arg2[%c0_24] : memref<6xf32, #tpu.memory_space<smem>>
    %c1_25 = arith.constant 1 : index
    %19 = memref.load %arg2[%c1_25] : memref<6xf32, #tpu.memory_space<smem>>
    %c2_26 = arith.constant 2 : index
    %20 = memref.load %arg2[%c2_26] : memref<6xf32, #tpu.memory_space<smem>>
    %cst = arith.constant dense<0.000000e+00> : vector<16x4xf32>
    %21 = tpu.matmul %0, %4, %cst {dimension_numbers = #tpu.dot_dimension_numbers<[1], [0], [0], [1], [0, 0, 1, 1], [], []>} : vector<16x128xf32>, vector<128x4xf32>, vector<16x4xf32> -> vector<16x4xf32>
    %cst_27 = arith.constant 3.125000e-02 : f32
    %22 = vector.broadcast %cst_27 : f32 to vector<16x4xf32>
    %23 = arith.mulf %21, %22 : vector<16x4xf32>
    %cst_28 = arith.constant dense<0.000000e+00> : vector<16x128xf32>
    %24 = tpu.matmul %23, %5, %cst_28 {dimension_numbers = #tpu.dot_dimension_numbers<[1], [0], [0], [1], [0, 0, 1, 1], [], []>} : vector<16x4xf32>, vector<4x128xf32>, vector<16x128xf32> -> vector<16x128xf32>
    %25 = arith.subf %0, %24 : vector<16x128xf32>
    %26 = arith.mulf %25, %25 : vector<16x128xf32>
    %cst_29 = arith.constant dense<0.000000e+00> : vector<16x4xf32>
    %27 = tpu.matmul %26, %4, %cst_29 {dimension_numbers = #tpu.dot_dimension_numbers<[1], [0], [0], [1], [0, 0, 1, 1], [], []>} : vector<16x128xf32>, vector<128x4xf32>, vector<16x4xf32> -> vector<16x4xf32>
    %cst_30 = arith.constant 3.125000e-02 : f32
    %28 = vector.broadcast %cst_30 : f32 to vector<16x4xf32>
    %29 = arith.mulf %27, %28 : vector<16x4xf32>
    %cst_31 = arith.constant dense<0.000000e+00> : vector<16x128xf32>
    %30 = tpu.matmul %29, %5, %cst_31 {dimension_numbers = #tpu.dot_dimension_numbers<[1], [0], [0], [1], [0, 0, 1, 1], [], []>} : vector<16x4xf32>, vector<4x128xf32>, vector<16x128xf32> -> vector<16x128xf32>
    %cst_32 = arith.constant 9.99999974E-6 : f32
    %31 = vector.broadcast %cst_32 : f32 to vector<16x128xf32>
    %32 = arith.addf %30, %31 : vector<16x128xf32>
    %33 = math.rsqrt %32 : vector<16x128xf32>
    %34 = arith.mulf %25, %33 : vector<16x128xf32>
    %35 = vector.broadcast %12 : vector<1x128xf32> to vector<16x128xf32>
    %36 = arith.mulf %34, %35 : vector<16x128xf32>
    %37 = vector.broadcast %13 : vector<1x128xf32> to vector<16x128xf32>
    %38 = arith.addf %36, %37 : vector<16x128xf32>
    %cst_33 = arith.constant dense<0.000000e+00> : vector<32x128xf32>
    %39 = tpu.matmul %1, %38, %cst_33 {dimension_numbers = #tpu.dot_dimension_numbers<[1], [0], [0], [1], [0, 0, 1, 1], [], []>} : vector<32x16xf32>, vector<16x128xf32>, vector<32x128xf32> -> vector<32x128xf32>
    %40 = vector.extract_strided_slice %39 {offsets = [0, 0], sizes = [16, 128], strides = [1, 1]} : vector<32x128xf32> to vector<16x128xf32>
    %41 = vector.extract_strided_slice %39 {offsets = [16, 0], sizes = [16, 128], strides = [1, 1]} : vector<32x128xf32> to vector<16x128xf32>
    %42 = arith.mulf %40, %40 : vector<16x128xf32>
    %43 = arith.mulf %41, %41 : vector<16x128xf32>
    %44 = arith.addf %42, %43 : vector<16x128xf32>
    %cst_34 = arith.constant dense<0.000000e+00> : vector<16x4xf32>
    %45 = tpu.matmul %44, %4, %cst_34 {dimension_numbers = #tpu.dot_dimension_numbers<[1], [0], [0], [1], [0, 0, 1, 1], [], []>} : vector<16x128xf32>, vector<128x4xf32>, vector<16x4xf32> -> vector<16x4xf32>
    %cst_35 = arith.constant 1.000000e+30 : f32
    %46 = vector.broadcast %cst_35 : f32 to vector<16x4xf32>
    %47 = arith.select %11, %46, %45 : vector<16x4xi1>, vector<16x4xf32>
    %c0_36 = arith.constant 0 : index
    %c0_37 = arith.constant 0 : index
    %48 = vector.load %arg12[%c0_36, %c0_37] : memref<16x4xf32, #tpu.memory_space<vmem>>, vector<16x4xf32>
    tpu.vector_store %arg12[%c0_36, %c0_37], %47 {strides = array<i32>} : memref<16x4xf32, #tpu.memory_space<vmem>>, vector<16x4xf32>,
    %cst_38 = arith.constant 0.000000e+00 : f32
    %49 = vector.broadcast %cst_38 : f32 to vector<16x4xf32>
    %c0_39 = arith.constant 0 : index
    %c0_40 = arith.constant 0 : index
    %50 = vector.load %arg12[%c0_39, %c0_40] : memref<16x4xf32, #tpu.memory_space<vmem>>, vector<1x4xf32>
    %51 = vector.broadcast %50 : vector<1x4xf32> to vector<16x4xf32>
    %52 = arith.cmpf ole, %51, %47 : vector<16x4xf32>
    %cst_41 = arith.constant 1.000000e+00 : f32
    %cst_42 = arith.constant 0.000000e+00 : f32
    %53 = vector.broadcast %cst_41 : f32 to vector<16x4xf32>
    %54 = vector.broadcast %cst_42 : f32 to vector<16x4xf32>
    %55 = arith.select %52, %53, %54 : vector<16x4xi1>, vector<16x4xf32>
    %56 = arith.addf %49, %55 : vector<16x4xf32>
    %c1_43 = arith.constant 1 : index
    %c0_44 = arith.constant 0 : index
    %57 = vector.load %arg12[%c1_43, %c0_44] : memref<16x4xf32, #tpu.memory_space<vmem>>, vector<1x4xf32>
    %58 = vector.broadcast %57 : vector<1x4xf32> to vector<16x4xf32>
    %59 = arith.cmpf ole, %58, %47 : vector<16x4xf32>
    %cst_45 = arith.constant 1.000000e+00 : f32
    %cst_46 = arith.constant 0.000000e+00 : f32
    %60 = vector.broadcast %cst_45 : f32 to vector<16x4xf32>
    %61 = vector.broadcast %cst_46 : f32 to vector<16x4xf32>
    %62 = arith.select %59, %60, %61 : vector<16x4xi1>, vector<16x4xf32>
    %63 = arith.addf %56, %62 : vector<16x4xf32>
    %c2_47 = arith.constant 2 : index
    %c0_48 = arith.constant 0 : index
    %64 = vector.load %arg12[%c2_47, %c0_48] : memref<16x4xf32, #tpu.memory_space<vmem>>, vector<1x4xf32>
    %65 = vector.broadcast %64 : vector<1x4xf32> to vector<16x4xf32>
    %66 = arith.cmpf ole, %65, %47 : vector<16x4xf32>
    %cst_49 = arith.constant 1.000000e+00 : f32
    %cst_50 = arith.constant 0.000000e+00 : f32
    %67 = vector.broadcast %cst_49 : f32 to vector<16x4xf32>
    %68 = vector.broadcast %cst_50 : f32 to vector<16x4xf32>
    %69 = arith.select %66, %67, %68 : vector<16x4xi1>, vector<16x4xf32>
    %70 = arith.addf %63, %69 : vector<16x4xf32>
    %c3_51 = arith.constant 3 : index
    %c0_52 = arith.constant 0 : index
    %71 = vector.load %arg12[%c3_51, %c0_52] : memref<16x4xf32, #tpu.memory_space<vmem>>, vector<1x4xf32>
    %72 = vector.broadcast %71 : vector<1x4xf32> to vector<16x4xf32>
    %73 = arith.cmpf ole, %72, %47 : vector<16x4xf32>
    %cst_53 = arith.constant 1.000000e+00 : f32
    %cst_54 = arith.constant 0.000000e+00 : f32
    %74 = vector.broadcast %cst_53 : f32 to vector<16x4xf32>
    %75 = vector.broadcast %cst_54 : f32 to vector<16x4xf32>
    %76 = arith.select %73, %74, %75 : vector<16x4xi1>, vector<16x4xf32>
    %77 = arith.addf %70, %76 : vector<16x4xf32>
    %c4_55 = arith.constant 4 : index
    %c0_56 = arith.constant 0 : index
    %78 = vector.load %arg12[%c4_55, %c0_56] : memref<16x4xf32, #tpu.memory_space<vmem>>, vector<1x4xf32>
    %79 = vector.broadcast %78 : vector<1x4xf32> to vector<16x4xf32>
    %80 = arith.cmpf ole, %79, %47 : vector<16x4xf32>
    %cst_57 = arith.constant 1.000000e+00 : f32
    %cst_58 = arith.constant 0.000000e+00 : f32
    %81 = vector.broadcast %cst_57 : f32 to vector<16x4xf32>
    %82 = vector.broadcast %cst_58 : f32 to vector<16x4xf32>
    %83 = arith.select %80, %81, %82 : vector<16x4xi1>, vector<16x4xf32>
    %84 = arith.addf %77, %83 : vector<16x4xf32>
    %c5_59 = arith.constant 5 : index
    %c0_60 = arith.constant 0 : index
    %85 = vector.load %arg12[%c5_59, %c0_60] : memref<16x4xf32, #tpu.memory_space<vmem>>, vector<1x4xf32>
    %86 = vector.broadcast %85 : vector<1x4xf32> to vector<16x4xf32>
    %87 = arith.cmpf ole, %86, %47 : vector<16x4xf32>
    %cst_61 = arith.constant 1.000000e+00 : f32
    %cst_62 = arith.constant 0.000000e+00 : f32
    %88 = vector.broadcast %cst_61 : f32 to vector<16x4xf32>
    %89 = vector.broadcast %cst_62 : f32 to vector<16x4xf32>
    %90 = arith.select %87, %88, %89 : vector<16x4xi1>, vector<16x4xf32>
    %91 = arith.addf %84, %90 : vector<16x4xf32>
    %c6 = arith.constant 6 : index
    %c0_63 = arith.constant 0 : index
    %92 = vector.load %arg12[%c6, %c0_63] : memref<16x4xf32, #tpu.memory_space<vmem>>, vector<1x4xf32>
    %93 = vector.broadcast %92 : vector<1x4xf32> to vector<16x4xf32>
    %94 = arith.cmpf ole, %93, %47 : vector<16x4xf32>
    %cst_64 = arith.constant 1.000000e+00 : f32
    %cst_65 = arith.constant 0.000000e+00 : f32
    %95 = vector.broadcast %cst_64 : f32 to vector<16x4xf32>
    %96 = vector.broadcast %cst_65 : f32 to vector<16x4xf32>
    %97 = arith.select %94, %95, %96 : vector<16x4xi1>, vector<16x4xf32>
    %98 = arith.addf %91, %97 : vector<16x4xf32>
    %c7 = arith.constant 7 : index
    %c0_66 = arith.constant 0 : index
    %99 = vector.load %arg12[%c7, %c0_66] : memref<16x4xf32, #tpu.memory_space<vmem>>, vector<1x4xf32>
    %100 = vector.broadcast %99 : vector<1x4xf32> to vector<16x4xf32>
    %101 = arith.cmpf ole, %100, %47 : vector<16x4xf32>
    %cst_67 = arith.constant 1.000000e+00 : f32
    %cst_68 = arith.constant 0.000000e+00 : f32
    %102 = vector.broadcast %cst_67 : f32 to vector<16x4xf32>
    %103 = vector.broadcast %cst_68 : f32 to vector<16x4xf32>
    %104 = arith.select %101, %102, %103 : vector<16x4xi1>, vector<16x4xf32>
    %105 = arith.addf %98, %104 : vector<16x4xf32>
    %c8 = arith.constant 8 : index
    %c0_69 = arith.constant 0 : index
    %106 = vector.load %arg12[%c8, %c0_69] : memref<16x4xf32, #tpu.memory_space<vmem>>, vector<1x4xf32>
    %107 = vector.broadcast %106 : vector<1x4xf32> to vector<16x4xf32>
    %108 = arith.cmpf ole, %107, %47 : vector<16x4xf32>
    %cst_70 = arith.constant 1.000000e+00 : f32
    %cst_71 = arith.constant 0.000000e+00 : f32
    %109 = vector.broadcast %cst_70 : f32 to vector<16x4xf32>
    %110 = vector.broadcast %cst_71 : f32 to vector<16x4xf32>
    %111 = arith.select %108, %109, %110 : vector<16x4xi1>, vector<16x4xf32>
    %112 = arith.addf %105, %111 : vector<16x4xf32>
    %cst_72 = arith.constant 5.000000e+00 : f32
    %113 = vector.broadcast %cst_72 : f32 to vector<16x4xf32>
    %114 = arith.cmpf oge, %112, %113 : vector<16x4xf32>
    %cst_73 = arith.constant 1.000000e+30 : f32
    %115 = vector.broadcast %cst_73 : f32 to vector<16x4xf32>
    %116 = arith.select %114, %47, %115 : vector<16x4xi1>, vector<16x4xf32>
    %cst_74 = arith.constant dense<0x7F800000> : vector<4xf32>
    %117 = vector.multi_reduction <minimumf>, %116, %cst_74 [0] : vector<16x4xf32> to vector<4xf32>
    %118 = vector.shape_cast %117 : vector<4xf32> to vector<1x4xf32>
    %cst_75 = arith.constant 9.99999997E-7 : f32
    %119 = vector.broadcast %cst_75 : f32 to vector<1x4xf32>
    %120 = arith.addf %118, %119 : vector<1x4xf32>
    %121 = vector.broadcast %120 : vector<1x4xf32> to vector<16x4xf32>
    %122 = arith.divf %45, %121 : vector<16x4xf32>
    %cst_76 = arith.constant 1.000000e+30 : f32
    %123 = vector.broadcast %cst_76 : f32 to vector<16x4xf32>
    %124 = arith.select %11, %123, %122 : vector<16x4xi1>, vector<16x4xf32>
    %cst_77 = arith.constant dense<0.000000e+00> : vector<16x16xf32>
    %125 = tpu.matmul %124, %6, %cst_77 {dimension_numbers = #tpu.dot_dimension_numbers<[1], [0], [0], [1], [0, 0, 1, 1], [], []>} : vector<16x4xf32>, vector<4x16xf32>, vector<16x16xf32> -> vector<16x16xf32>
    %cst_78 = arith.constant dense<0.000000e+00> : vector<16x16xf32>
    %126 = tpu.matmul %124, %7, %cst_78 {dimension_numbers = #tpu.dot_dimension_numbers<[1], [0], [0], [1], [0, 0, 1, 1], [], []>} : vector<16x4xf32>, vector<4x16xf32>, vector<16x16xf32> -> vector<16x16xf32>
    %c0_79 = arith.constant 0 : index
    %c0_80 = arith.constant 0 : index
    %127 = vector.load %arg13[%c0_79, %c0_80] : memref<16x16xf32, #tpu.memory_space<vmem>>, vector<16x16xf32>
    tpu.vector_store %arg13[%c0_79, %c0_80], %125 {strides = array<i32>} : memref<16x16xf32, #tpu.memory_space<vmem>>, vector<16x16xf32>,
    %cst_81 = arith.constant 0.000000e+00 : f32
    %128 = vector.broadcast %cst_81 : f32 to vector<16x16xf32>
    %c0_82 = arith.constant 0 : index
    %c0_83 = arith.constant 0 : index
    %129 = vector.load %arg13[%c0_82, %c0_83] : memref<16x16xf32, #tpu.memory_space<vmem>>, vector<1x16xf32>
    %130 = vector.broadcast %129 : vector<1x16xf32> to vector<16x16xf32>
    %131 = arith.cmpf ole, %130, %126 : vector<16x16xf32>
    %cst_84 = arith.constant 1.000000e+00 : f32
    %cst_85 = arith.constant 0.000000e+00 : f32
    %132 = vector.broadcast %cst_84 : f32 to vector<16x16xf32>
    %133 = vector.broadcast %cst_85 : f32 to vector<16x16xf32>
    %134 = arith.select %131, %132, %133 : vector<16x16xi1>, vector<16x16xf32>
    %135 = arith.addf %128, %134 : vector<16x16xf32>
    %c1_86 = arith.constant 1 : index
    %c0_87 = arith.constant 0 : index
    %136 = vector.load %arg13[%c1_86, %c0_87] : memref<16x16xf32, #tpu.memory_space<vmem>>, vector<1x16xf32>
    %137 = vector.broadcast %136 : vector<1x16xf32> to vector<16x16xf32>
    %138 = arith.cmpf ole, %137, %126 : vector<16x16xf32>
    %cst_88 = arith.constant 1.000000e+00 : f32
    %cst_89 = arith.constant 0.000000e+00 : f32
    %139 = vector.broadcast %cst_88 : f32 to vector<16x16xf32>
    %140 = vector.broadcast %cst_89 : f32 to vector<16x16xf32>
    %141 = arith.select %138, %139, %140 : vector<16x16xi1>, vector<16x16xf32>
    %142 = arith.addf %135, %141 : vector<16x16xf32>
    %c2_90 = arith.constant 2 : index
    %c0_91 = arith.constant 0 : index
    %143 = vector.load %arg13[%c2_90, %c0_91] : memref<16x16xf32, #tpu.memory_space<vmem>>, vector<1x16xf32>
    %144 = vector.broadcast %143 : vector<1x16xf32> to vector<16x16xf32>
    %145 = arith.cmpf ole, %144, %126 : vector<16x16xf32>
    %cst_92 = arith.constant 1.000000e+00 : f32
    %cst_93 = arith.constant 0.000000e+00 : f32
    %146 = vector.broadcast %cst_92 : f32 to vector<16x16xf32>
    %147 = vector.broadcast %cst_93 : f32 to vector<16x16xf32>
    %148 = arith.select %145, %146, %147 : vector<16x16xi1>, vector<16x16xf32>
    %149 = arith.addf %142, %148 : vector<16x16xf32>
    %c3_94 = arith.constant 3 : index
    %c0_95 = arith.constant 0 : index
    %150 = vector.load %arg13[%c3_94, %c0_95] : memref<16x16xf32, #tpu.memory_space<vmem>>, vector<1x16xf32>
    %151 = vector.broadcast %150 : vector<1x16xf32> to vector<16x16xf32>
    %152 = arith.cmpf ole, %151, %126 : vector<16x16xf32>
    %cst_96 = arith.constant 1.000000e+00 : f32
    %cst_97 = arith.constant 0.000000e+00 : f32
    %153 = vector.broadcast %cst_96 : f32 to vector<16x16xf32>
    %154 = vector.broadcast %cst_97 : f32 to vector<16x16xf32>
    %155 = arith.select %152, %153, %154 : vector<16x16xi1>, vector<16x16xf32>
    %156 = arith.addf %149, %155 : vector<16x16xf32>
    %c4_98 = arith.constant 4 : index
    %c0_99 = arith.constant 0 : index
    %157 = vector.load %arg13[%c4_98, %c0_99] : memref<16x16xf32, #tpu.memory_space<vmem>>, vector<1x16xf32>
    %158 = vector.broadcast %157 : vector<1x16xf32> to vector<16x16xf32>
    %159 = arith.cmpf ole, %158, %126 : vector<16x16xf32>
    %cst_100 = arith.constant 1.000000e+00 : f32
    %cst_101 = arith.constant 0.000000e+00 : f32
    %160 = vector.broadcast %cst_100 : f32 to vector<16x16xf32>
    %161 = vector.broadcast %cst_101 : f32 to vector<16x16xf32>
    %162 = arith.select %159, %160, %161 : vector<16x16xi1>, vector<16x16xf32>
    %163 = arith.addf %156, %162 : vector<16x16xf32>
    %c5_102 = arith.constant 5 : index
    %c0_103 = arith.constant 0 : index
    %164 = vector.load %arg13[%c5_102, %c0_103] : memref<16x16xf32, #tpu.memory_space<vmem>>, vector<1x16xf32>
    %165 = vector.broadcast %164 : vector<1x16xf32> to vector<16x16xf32>
    %166 = arith.cmpf ole, %165, %126 : vector<16x16xf32>
    %cst_104 = arith.constant 1.000000e+00 : f32
    %cst_105 = arith.constant 0.000000e+00 : f32
    %167 = vector.broadcast %cst_104 : f32 to vector<16x16xf32>
    %168 = vector.broadcast %cst_105 : f32 to vector<16x16xf32>
    %169 = arith.select %166, %167, %168 : vector<16x16xi1>, vector<16x16xf32>
    %170 = arith.addf %163, %169 : vector<16x16xf32>
    %c6_106 = arith.constant 6 : index
    %c0_107 = arith.constant 0 : index
    %171 = vector.load %arg13[%c6_106, %c0_107] : memref<16x16xf32, #tpu.memory_space<vmem>>, vector<1x16xf32>
    %172 = vector.broadcast %171 : vector<1x16xf32> to vector<16x16xf32>
    %173 = arith.cmpf ole, %172, %126 : vector<16x16xf32>
    %cst_108 = arith.constant 1.000000e+00 : f32
    %cst_109 = arith.constant 0.000000e+00 : f32
    %174 = vector.broadcast %cst_108 : f32 to vector<16x16xf32>
    %175 = vector.broadcast %cst_109 : f32 to vector<16x16xf32>
    %176 = arith.select %173, %174, %175 : vector<16x16xi1>, vector<16x16xf32>
    %177 = arith.addf %170, %176 : vector<16x16xf32>
    %c7_110 = arith.constant 7 : index
    %c0_111 = arith.constant 0 : index
    %178 = vector.load %arg13[%c7_110, %c0_111] : memref<16x16xf32, #tpu.memory_space<vmem>>, vector<1x16xf32>
    %179 = vector.broadcast %178 : vector<1x16xf32> to vector<16x16xf32>
    %180 = arith.cmpf ole, %179, %126 : vector<16x16xf32>
    %cst_112 = arith.constant 1.000000e+00 : f32
    %cst_113 = arith.constant 0.000000e+00 : f32
    %181 = vector.broadcast %cst_112 : f32 to vector<16x16xf32>
    %182 = vector.broadcast %cst_113 : f32 to vector<16x16xf32>
    %183 = arith.select %180, %181, %182 : vector<16x16xi1>, vector<16x16xf32>
    %184 = arith.addf %177, %183 : vector<16x16xf32>
    %c8_114 = arith.constant 8 : index
    %c0_115 = arith.constant 0 : index
    %185 = vector.load %arg13[%c8_114, %c0_115] : memref<16x16xf32, #tpu.memory_space<vmem>>, vector<1x16xf32>
    %186 = vector.broadcast %185 : vector<1x16xf32> to vector<16x16xf32>
    %187 = arith.cmpf ole, %186, %126 : vector<16x16xf32>
    %cst_116 = arith.constant 1.000000e+00 : f32
    %cst_117 = arith.constant 0.000000e+00 : f32
    %188 = vector.broadcast %cst_116 : f32 to vector<16x16xf32>
    %189 = vector.broadcast %cst_117 : f32 to vector<16x16xf32>
    %190 = arith.select %187, %188, %189 : vector<16x16xi1>, vector<16x16xf32>
    %191 = arith.addf %184, %190 : vector<16x16xf32>
    %cst_118 = arith.constant dense<0.000000e+00> : vector<16x4xf32>
    %192 = tpu.matmul %191, %8, %cst_118 {dimension_numbers = #tpu.dot_dimension_numbers<[1], [0], [0], [1], [0, 0, 1, 1], [], []>} : vector<16x16xf32>, vector<16x4xf32>, vector<16x4xf32> -> vector<16x4xf32>
    %193 = vector.broadcast %18 : f32 to vector<16x4xf32>
    %194 = arith.cmpf oge, %192, %193 : vector<16x4xf32>
    %cst_119 = arith.constant 1.000000e+30 : f32
    %195 = vector.broadcast %cst_119 : f32 to vector<16x4xf32>
    %196 = arith.select %194, %124, %195 : vector<16x4xi1>, vector<16x4xf32>
    %197 = vector.shape_cast %196 : vector<16x4xf32> to vector<1x16x4xf32>
    %cst_120 = arith.constant dense<0x7F800000> : vector<1xf32>
    %198 = vector.multi_reduction <minimumf>, %197, %cst_120 [1, 2] : vector<1x16x4xf32> to vector<1xf32>
    %199 = vector.shape_cast %198 : vector<1xf32> to vector<1x1x1xf32>
    %200 = vector.extract %199[0, 0, 0] : f32 from vector<1x1x1xf32>
    %201 = vector.broadcast %19 : f32 to vector<16x4xf32>
    %202 = arith.cmpf oge, %192, %201 : vector<16x4xf32>
    %cst_121 = arith.constant 1.000000e+30 : f32
    %203 = vector.broadcast %cst_121 : f32 to vector<16x4xf32>
    %204 = arith.select %202, %124, %203 : vector<16x4xi1>, vector<16x4xf32>
    %205 = vector.shape_cast %204 : vector<16x4xf32> to vector<1x16x4xf32>
    %cst_122 = arith.constant dense<0x7F800000> : vector<1xf32>
    %206 = vector.multi_reduction <minimumf>, %205, %cst_122 [1, 2] : vector<1x16x4xf32> to vector<1xf32>
    %207 = vector.shape_cast %206 : vector<1xf32> to vector<1x1x1xf32>
    %208 = vector.extract %207[0, 0, 0] : f32 from vector<1x1x1xf32>
    %209 = arith.subf %208, %200 : f32
    %210 = arith.mulf %20, %209 : f32
    %211 = arith.addf %200, %210 : f32
    %212 = vector.broadcast %211 : f32 to vector<16x4xf32>
    %213 = arith.cmpf olt, %124, %212 : vector<16x4xf32>
    %cst_123 = arith.constant 1.000000e+00 : f32
    %cst_124 = arith.constant 0.000000e+00 : f32
    %214 = vector.broadcast %cst_123 : f32 to vector<16x4xf32>
    %215 = vector.broadcast %cst_124 : f32 to vector<16x4xf32>
    %216 = arith.select %213, %214, %215 : vector<16x4xi1>, vector<16x4xf32>
    %cst_125 = arith.constant dense<0.000000e+00> : vector<16x128xf32>
    %217 = tpu.matmul %216, %5, %cst_125 {dimension_numbers = #tpu.dot_dimension_numbers<[1], [0], [0], [1], [0, 0, 1, 1], [], []>} : vector<16x4xf32>, vector<4x128xf32>, vector<16x128xf32> -> vector<16x128xf32>
    %218 = vector.broadcast %16 : vector<1x128xf32> to vector<16x128xf32>
    %219 = arith.mulf %217, %218 : vector<16x128xf32>
    %220 = vector.broadcast %14 : vector<1x128xf32> to vector<16x128xf32>
    %221 = arith.addf %220, %219 : vector<16x128xf32>
    %222 = vector.broadcast %17 : vector<1x128xf32> to vector<16x128xf32>
    %223 = arith.mulf %217, %222 : vector<16x128xf32>
    %224 = vector.broadcast %15 : vector<1x128xf32> to vector<16x128xf32>
    %225 = arith.addf %224, %223 : vector<16x128xf32>
    %226 = arith.mulf %40, %221 : vector<16x128xf32>
    %227 = arith.mulf %41, %225 : vector<16x128xf32>
    %228 = arith.subf %226, %227 : vector<16x128xf32>
    %229 = arith.mulf %40, %225 : vector<16x128xf32>
    %230 = arith.mulf %41, %221 : vector<16x128xf32>
    %231 = arith.addf %229, %230 : vector<16x128xf32>
    %cst_126 = arith.constant dense<0.000000e+00> : vector<16x128xf32>
    %232 = tpu.matmul %2, %228, %cst_126 {dimension_numbers = #tpu.dot_dimension_numbers<[1], [0], [0], [1], [0, 0, 1, 1], [], []>} : vector<16x16xf32>, vector<16x128xf32>, vector<16x128xf32> -> vector<16x128xf32>
    %233 = arith.addf %0, %232 : vector<16x128xf32>
    %cst_127 = arith.constant dense<0.000000e+00> : vector<16x128xf32>
    %234 = tpu.matmul %3, %231, %cst_127 {dimension_numbers = #tpu.dot_dimension_numbers<[1], [0], [0], [1], [0, 0, 1, 1], [], []>} : vector<16x16xf32>, vector<16x128xf32>, vector<16x128xf32> -> vector<16x128xf32>
    %235 = arith.addf %233, %234 : vector<16x128xf32>
    %c6_128 = arith.constant 6 : index
    %c0_129 = arith.constant 0 : index
    %236 = vector.load %arg1[%c6_128, %c0_129] : memref<12x128xf32, #tpu.memory_space<vmem>>, vector<1x128xf32>
    %c7_130 = arith.constant 7 : index
    %c0_131 = arith.constant 0 : index
    %237 = vector.load %arg1[%c7_130, %c0_131] : memref<12x128xf32, #tpu.memory_space<vmem>>, vector<1x128xf32>
    %c8_132 = arith.constant 8 : index
    %c0_133 = arith.constant 0 : index
    %238 = vector.load %arg1[%c8_132, %c0_133] : memref<12x128xf32, #tpu.memory_space<vmem>>, vector<1x128xf32>
    %c9 = arith.constant 9 : index
    %c0_134 = arith.constant 0 : index
    %239 = vector.load %arg1[%c9, %c0_134] : memref<12x128xf32, #tpu.memory_space<vmem>>, vector<1x128xf32>
    %c10 = arith.constant 10 : index
    %c0_135 = arith.constant 0 : index
    %240 = vector.load %arg1[%c10, %c0_135] : memref<12x128xf32, #tpu.memory_space<vmem>>, vector<1x128xf32>
    %c11 = arith.constant 11 : index
    %c0_136 = arith.constant 0 : index
    %241 = vector.load %arg1[%c11, %c0_136] : memref<12x128xf32, #tpu.memory_space<vmem>>, vector<1x128xf32>
    %c3_137 = arith.constant 3 : index
    %242 = memref.load %arg2[%c3_137] : memref<6xf32, #tpu.memory_space<smem>>
    %c4_138 = arith.constant 4 : index
    %243 = memref.load %arg2[%c4_138] : memref<6xf32, #tpu.memory_space<smem>>
    %c5_139 = arith.constant 5 : index
    %244 = memref.load %arg2[%c5_139] : memref<6xf32, #tpu.memory_space<smem>>
    %cst_140 = arith.constant dense<0.000000e+00> : vector<16x4xf32>
    %245 = tpu.matmul %235, %4, %cst_140 {dimension_numbers = #tpu.dot_dimension_numbers<[1], [0], [0], [1], [0, 0, 1, 1], [], []>} : vector<16x128xf32>, vector<128x4xf32>, vector<16x4xf32> -> vector<16x4xf32>
    %cst_141 = arith.constant 3.125000e-02 : f32
    %246 = vector.broadcast %cst_141 : f32 to vector<16x4xf32>
    %247 = arith.mulf %245, %246 : vector<16x4xf32>
    %cst_142 = arith.constant dense<0.000000e+00> : vector<16x128xf32>
    %248 = tpu.matmul %247, %5, %cst_142 {dimension_numbers = #tpu.dot_dimension_numbers<[1], [0], [0], [1], [0, 0, 1, 1], [], []>} : vector<16x4xf32>, vector<4x128xf32>, vector<16x128xf32> -> vector<16x128xf32>
    %249 = arith.subf %235, %248 : vector<16x128xf32>
    %250 = arith.mulf %249, %249 : vector<16x128xf32>
    %cst_143 = arith.constant dense<0.000000e+00> : vector<16x4xf32>
    %251 = tpu.matmul %250, %4, %cst_143 {dimension_numbers = #tpu.dot_dimension_numbers<[1], [0], [0], [1], [0, 0, 1, 1], [], []>} : vector<16x128xf32>, vector<128x4xf32>, vector<16x4xf32> -> vector<16x4xf32>
    %cst_144 = arith.constant 3.125000e-02 : f32
    %252 = vector.broadcast %cst_144 : f32 to vector<16x4xf32>
    %253 = arith.mulf %251, %252 : vector<16x4xf32>
    %cst_145 = arith.constant dense<0.000000e+00> : vector<16x128xf32>
    %254 = tpu.matmul %253, %5, %cst_145 {dimension_numbers = #tpu.dot_dimension_numbers<[1], [0], [0], [1], [0, 0, 1, 1], [], []>} : vector<16x4xf32>, vector<4x128xf32>, vector<16x128xf32> -> vector<16x128xf32>
    %cst_146 = arith.constant 9.99999974E-6 : f32
    %255 = vector.broadcast %cst_146 : f32 to vector<16x128xf32>
    %256 = arith.addf %254, %255 : vector<16x128xf32>
    %257 = math.rsqrt %256 : vector<16x128xf32>
    %258 = arith.mulf %249, %257 : vector<16x128xf32>
    %259 = vector.broadcast %236 : vector<1x128xf32> to vector<16x128xf32>
    %260 = arith.mulf %258, %259 : vector<16x128xf32>
    %261 = vector.broadcast %237 : vector<1x128xf32> to vector<16x128xf32>
    %262 = arith.addf %260, %261 : vector<16x128xf32>
    %cst_147 = arith.constant dense<0.000000e+00> : vector<32x128xf32>
    %263 = tpu.matmul %1, %262, %cst_147 {dimension_numbers = #tpu.dot_dimension_numbers<[1], [0], [0], [1], [0, 0, 1, 1], [], []>} : vector<32x16xf32>, vector<16x128xf32>, vector<32x128xf32> -> vector<32x128xf32>
    %264 = vector.extract_strided_slice %263 {offsets = [0, 0], sizes = [16, 128], strides = [1, 1]} : vector<32x128xf32> to vector<16x128xf32>
    %265 = vector.extract_strided_slice %263 {offsets = [16, 0], sizes = [16, 128], strides = [1, 1]} : vector<32x128xf32> to vector<16x128xf32>
    %266 = arith.mulf %264, %264 : vector<16x128xf32>
    %267 = arith.mulf %265, %265 : vector<16x128xf32>
    %268 = arith.addf %266, %267 : vector<16x128xf32>
    %cst_148 = arith.constant dense<0.000000e+00> : vector<16x4xf32>
    %269 = tpu.matmul %268, %4, %cst_148 {dimension_numbers = #tpu.dot_dimension_numbers<[1], [0], [0], [1], [0, 0, 1, 1], [], []>} : vector<16x128xf32>, vector<128x4xf32>, vector<16x4xf32> -> vector<16x4xf32>
    %cst_149 = arith.constant 1.000000e+30 : f32
    %270 = vector.broadcast %cst_149 : f32 to vector<16x4xf32>
    %271 = arith.select %11, %270, %269 : vector<16x4xi1>, vector<16x4xf32>
    %c0_150 = arith.constant 0 : index
    %c0_151 = arith.constant 0 : index
    %272 = vector.load %arg12[%c0_150, %c0_151] : memref<16x4xf32, #tpu.memory_space<vmem>>, vector<16x4xf32>
    tpu.vector_store %arg12[%c0_150, %c0_151], %271 {strides = array<i32>} : memref<16x4xf32, #tpu.memory_space<vmem>>, vector<16x4xf32>,
    %cst_152 = arith.constant 0.000000e+00 : f32
    %273 = vector.broadcast %cst_152 : f32 to vector<16x4xf32>
    %c0_153 = arith.constant 0 : index
    %c0_154 = arith.constant 0 : index
    %274 = vector.load %arg12[%c0_153, %c0_154] : memref<16x4xf32, #tpu.memory_space<vmem>>, vector<1x4xf32>
    %275 = vector.broadcast %274 : vector<1x4xf32> to vector<16x4xf32>
    %276 = arith.cmpf ole, %275, %271 : vector<16x4xf32>
    %cst_155 = arith.constant 1.000000e+00 : f32
    %cst_156 = arith.constant 0.000000e+00 : f32
    %277 = vector.broadcast %cst_155 : f32 to vector<16x4xf32>
    %278 = vector.broadcast %cst_156 : f32 to vector<16x4xf32>
    %279 = arith.select %276, %277, %278 : vector<16x4xi1>, vector<16x4xf32>
    %280 = arith.addf %273, %279 : vector<16x4xf32>
    %c1_157 = arith.constant 1 : index
    %c0_158 = arith.constant 0 : index
    %281 = vector.load %arg12[%c1_157, %c0_158] : memref<16x4xf32, #tpu.memory_space<vmem>>, vector<1x4xf32>
    %282 = vector.broadcast %281 : vector<1x4xf32> to vector<16x4xf32>
    %283 = arith.cmpf ole, %282, %271 : vector<16x4xf32>
    %cst_159 = arith.constant 1.000000e+00 : f32
    %cst_160 = arith.constant 0.000000e+00 : f32
    %284 = vector.broadcast %cst_159 : f32 to vector<16x4xf32>
    %285 = vector.broadcast %cst_160 : f32 to vector<16x4xf32>
    %286 = arith.select %283, %284, %285 : vector<16x4xi1>, vector<16x4xf32>
    %287 = arith.addf %280, %286 : vector<16x4xf32>
    %c2_161 = arith.constant 2 : index
    %c0_162 = arith.constant 0 : index
    %288 = vector.load %arg12[%c2_161, %c0_162] : memref<16x4xf32, #tpu.memory_space<vmem>>, vector<1x4xf32>
    %289 = vector.broadcast %288 : vector<1x4xf32> to vector<16x4xf32>
    %290 = arith.cmpf ole, %289, %271 : vector<16x4xf32>
    %cst_163 = arith.constant 1.000000e+00 : f32
    %cst_164 = arith.constant 0.000000e+00 : f32
    %291 = vector.broadcast %cst_163 : f32 to vector<16x4xf32>
    %292 = vector.broadcast %cst_164 : f32 to vector<16x4xf32>
    %293 = arith.select %290, %291, %292 : vector<16x4xi1>, vector<16x4xf32>
    %294 = arith.addf %287, %293 : vector<16x4xf32>
    %c3_165 = arith.constant 3 : index
    %c0_166 = arith.constant 0 : index
    %295 = vector.load %arg12[%c3_165, %c0_166] : memref<16x4xf32, #tpu.memory_space<vmem>>, vector<1x4xf32>
    %296 = vector.broadcast %295 : vector<1x4xf32> to vector<16x4xf32>
    %297 = arith.cmpf ole, %296, %271 : vector<16x4xf32>
    %cst_167 = arith.constant 1.000000e+00 : f32
    %cst_168 = arith.constant 0.000000e+00 : f32
    %298 = vector.broadcast %cst_167 : f32 to vector<16x4xf32>
    %299 = vector.broadcast %cst_168 : f32 to vector<16x4xf32>
    %300 = arith.select %297, %298, %299 : vector<16x4xi1>, vector<16x4xf32>
    %301 = arith.addf %294, %300 : vector<16x4xf32>
    %c4_169 = arith.constant 4 : index
    %c0_170 = arith.constant 0 : index
    %302 = vector.load %arg12[%c4_169, %c0_170] : memref<16x4xf32, #tpu.memory_space<vmem>>, vector<1x4xf32>
    %303 = vector.broadcast %302 : vector<1x4xf32> to vector<16x4xf32>
    %304 = arith.cmpf ole, %303, %271 : vector<16x4xf32>
    %cst_171 = arith.constant 1.000000e+00 : f32
    %cst_172 = arith.constant 0.000000e+00 : f32
    %305 = vector.broadcast %cst_171 : f32 to vector<16x4xf32>
    %306 = vector.broadcast %cst_172 : f32 to vector<16x4xf32>
    %307 = arith.select %304, %305, %306 : vector<16x4xi1>, vector<16x4xf32>
    %308 = arith.addf %301, %307 : vector<16x4xf32>
    %c5_173 = arith.constant 5 : index
    %c0_174 = arith.constant 0 : index
    %309 = vector.load %arg12[%c5_173, %c0_174] : memref<16x4xf32, #tpu.memory_space<vmem>>, vector<1x4xf32>
    %310 = vector.broadcast %309 : vector<1x4xf32> to vector<16x4xf32>
    %311 = arith.cmpf ole, %310, %271 : vector<16x4xf32>
    %cst_175 = arith.constant 1.000000e+00 : f32
    %cst_176 = arith.constant 0.000000e+00 : f32
    %312 = vector.broadcast %cst_175 : f32 to vector<16x4xf32>
    %313 = vector.broadcast %cst_176 : f32 to vector<16x4xf32>
    %314 = arith.select %311, %312, %313 : vector<16x4xi1>, vector<16x4xf32>
    %315 = arith.addf %308, %314 : vector<16x4xf32>
    %c6_177 = arith.constant 6 : index
    %c0_178 = arith.constant 0 : index
    %316 = vector.load %arg12[%c6_177, %c0_178] : memref<16x4xf32, #tpu.memory_space<vmem>>, vector<1x4xf32>
    %317 = vector.broadcast %316 : vector<1x4xf32> to vector<16x4xf32>
    %318 = arith.cmpf ole, %317, %271 : vector<16x4xf32>
    %cst_179 = arith.constant 1.000000e+00 : f32
    %cst_180 = arith.constant 0.000000e+00 : f32
    %319 = vector.broadcast %cst_179 : f32 to vector<16x4xf32>
    %320 = vector.broadcast %cst_180 : f32 to vector<16x4xf32>
    %321 = arith.select %318, %319, %320 : vector<16x4xi1>, vector<16x4xf32>
    %322 = arith.addf %315, %321 : vector<16x4xf32>
    %c7_181 = arith.constant 7 : index
    %c0_182 = arith.constant 0 : index
    %323 = vector.load %arg12[%c7_181, %c0_182] : memref<16x4xf32, #tpu.memory_space<vmem>>, vector<1x4xf32>
    %324 = vector.broadcast %323 : vector<1x4xf32> to vector<16x4xf32>
    %325 = arith.cmpf ole, %324, %271 : vector<16x4xf32>
    %cst_183 = arith.constant 1.000000e+00 : f32
    %cst_184 = arith.constant 0.000000e+00 : f32
    %326 = vector.broadcast %cst_183 : f32 to vector<16x4xf32>
    %327 = vector.broadcast %cst_184 : f32 to vector<16x4xf32>
    %328 = arith.select %325, %326, %327 : vector<16x4xi1>, vector<16x4xf32>
    %329 = arith.addf %322, %328 : vector<16x4xf32>
    %c8_185 = arith.constant 8 : index
    %c0_186 = arith.constant 0 : index
    %330 = vector.load %arg12[%c8_185, %c0_186] : memref<16x4xf32, #tpu.memory_space<vmem>>, vector<1x4xf32>
    %331 = vector.broadcast %330 : vector<1x4xf32> to vector<16x4xf32>
    %332 = arith.cmpf ole, %331, %271 : vector<16x4xf32>
    %cst_187 = arith.constant 1.000000e+00 : f32
    %cst_188 = arith.constant 0.000000e+00 : f32
    %333 = vector.broadcast %cst_187 : f32 to vector<16x4xf32>
    %334 = vector.broadcast %cst_188 : f32 to vector<16x4xf32>
    %335 = arith.select %332, %333, %334 : vector<16x4xi1>, vector<16x4xf32>
    %336 = arith.addf %329, %335 : vector<16x4xf32>
    %cst_189 = arith.constant 5.000000e+00 : f32
    %337 = vector.broadcast %cst_189 : f32 to vector<16x4xf32>
    %338 = arith.cmpf oge, %336, %337 : vector<16x4xf32>
    %cst_190 = arith.constant 1.000000e+30 : f32
    %339 = vector.broadcast %cst_190 : f32 to vector<16x4xf32>
    %340 = arith.select %338, %271, %339 : vector<16x4xi1>, vector<16x4xf32>
    %cst_191 = arith.constant dense<0x7F800000> : vector<4xf32>
    %341 = vector.multi_reduction <minimumf>, %340, %cst_191 [0] : vector<16x4xf32> to vector<4xf32>
    %342 = vector.shape_cast %341 : vector<4xf32> to vector<1x4xf32>
    %cst_192 = arith.constant 9.99999997E-7 : f32
    %343 = vector.broadcast %cst_192 : f32 to vector<1x4xf32>
    %344 = arith.addf %342, %343 : vector<1x4xf32>
    %345 = vector.broadcast %344 : vector<1x4xf32> to vector<16x4xf32>
    %346 = arith.divf %269, %345 : vector<16x4xf32>
    %cst_193 = arith.constant 1.000000e+30 : f32
    %347 = vector.broadcast %cst_193 : f32 to vector<16x4xf32>
    %348 = arith.select %11, %347, %346 : vector<16x4xi1>, vector<16x4xf32>
    %cst_194 = arith.constant dense<0.000000e+00> : vector<16x16xf32>
    %349 = tpu.matmul %348, %6, %cst_194 {dimension_numbers = #tpu.dot_dimension_numbers<[1], [0], [0], [1], [0, 0, 1, 1], [], []>} : vector<16x4xf32>, vector<4x16xf32>, vector<16x16xf32> -> vector<16x16xf32>
    %cst_195 = arith.constant dense<0.000000e+00> : vector<16x16xf32>
    %350 = tpu.matmul %348, %7, %cst_195 {dimension_numbers = #tpu.dot_dimension_numbers<[1], [0], [0], [1], [0, 0, 1, 1], [], []>} : vector<16x4xf32>, vector<4x16xf32>, vector<16x16xf32> -> vector<16x16xf32>
    %c0_196 = arith.constant 0 : index
    %c0_197 = arith.constant 0 : index
    %351 = vector.load %arg13[%c0_196, %c0_197] : memref<16x16xf32, #tpu.memory_space<vmem>>, vector<16x16xf32>
    tpu.vector_store %arg13[%c0_196, %c0_197], %349 {strides = array<i32>} : memref<16x16xf32, #tpu.memory_space<vmem>>, vector<16x16xf32>,
    %cst_198 = arith.constant 0.000000e+00 : f32
    %352 = vector.broadcast %cst_198 : f32 to vector<16x16xf32>
    %c0_199 = arith.constant 0 : index
    %c0_200 = arith.constant 0 : index
    %353 = vector.load %arg13[%c0_199, %c0_200] : memref<16x16xf32, #tpu.memory_space<vmem>>, vector<1x16xf32>
    %354 = vector.broadcast %353 : vector<1x16xf32> to vector<16x16xf32>
    %355 = arith.cmpf ole, %354, %350 : vector<16x16xf32>
    %cst_201 = arith.constant 1.000000e+00 : f32
    %cst_202 = arith.constant 0.000000e+00 : f32
    %356 = vector.broadcast %cst_201 : f32 to vector<16x16xf32>
    %357 = vector.broadcast %cst_202 : f32 to vector<16x16xf32>
    %358 = arith.select %355, %356, %357 : vector<16x16xi1>, vector<16x16xf32>
    %359 = arith.addf %352, %358 : vector<16x16xf32>
    %c1_203 = arith.constant 1 : index
    %c0_204 = arith.constant 0 : index
    %360 = vector.load %arg13[%c1_203, %c0_204] : memref<16x16xf32, #tpu.memory_space<vmem>>, vector<1x16xf32>
    %361 = vector.broadcast %360 : vector<1x16xf32> to vector<16x16xf32>
    %362 = arith.cmpf ole, %361, %350 : vector<16x16xf32>
    %cst_205 = arith.constant 1.000000e+00 : f32
    %cst_206 = arith.constant 0.000000e+00 : f32
    %363 = vector.broadcast %cst_205 : f32 to vector<16x16xf32>
    %364 = vector.broadcast %cst_206 : f32 to vector<16x16xf32>
    %365 = arith.select %362, %363, %364 : vector<16x16xi1>, vector<16x16xf32>
    %366 = arith.addf %359, %365 : vector<16x16xf32>
    %c2_207 = arith.constant 2 : index
    %c0_208 = arith.constant 0 : index
    %367 = vector.load %arg13[%c2_207, %c0_208] : memref<16x16xf32, #tpu.memory_space<vmem>>, vector<1x16xf32>
    %368 = vector.broadcast %367 : vector<1x16xf32> to vector<16x16xf32>
    %369 = arith.cmpf ole, %368, %350 : vector<16x16xf32>
    %cst_209 = arith.constant 1.000000e+00 : f32
    %cst_210 = arith.constant 0.000000e+00 : f32
    %370 = vector.broadcast %cst_209 : f32 to vector<16x16xf32>
    %371 = vector.broadcast %cst_210 : f32 to vector<16x16xf32>
    %372 = arith.select %369, %370, %371 : vector<16x16xi1>, vector<16x16xf32>
    %373 = arith.addf %366, %372 : vector<16x16xf32>
    %c3_211 = arith.constant 3 : index
    %c0_212 = arith.constant 0 : index
    %374 = vector.load %arg13[%c3_211, %c0_212] : memref<16x16xf32, #tpu.memory_space<vmem>>, vector<1x16xf32>
    %375 = vector.broadcast %374 : vector<1x16xf32> to vector<16x16xf32>
    %376 = arith.cmpf ole, %375, %350 : vector<16x16xf32>
    %cst_213 = arith.constant 1.000000e+00 : f32
    %cst_214 = arith.constant 0.000000e+00 : f32
    %377 = vector.broadcast %cst_213 : f32 to vector<16x16xf32>
    %378 = vector.broadcast %cst_214 : f32 to vector<16x16xf32>
    %379 = arith.select %376, %377, %378 : vector<16x16xi1>, vector<16x16xf32>
    %380 = arith.addf %373, %379 : vector<16x16xf32>
    %c4_215 = arith.constant 4 : index
    %c0_216 = arith.constant 0 : index
    %381 = vector.load %arg13[%c4_215, %c0_216] : memref<16x16xf32, #tpu.memory_space<vmem>>, vector<1x16xf32>
    %382 = vector.broadcast %381 : vector<1x16xf32> to vector<16x16xf32>
    %383 = arith.cmpf ole, %382, %350 : vector<16x16xf32>
    %cst_217 = arith.constant 1.000000e+00 : f32
    %cst_218 = arith.constant 0.000000e+00 : f32
    %384 = vector.broadcast %cst_217 : f32 to vector<16x16xf32>
    %385 = vector.broadcast %cst_218 : f32 to vector<16x16xf32>
    %386 = arith.select %383, %384, %385 : vector<16x16xi1>, vector<16x16xf32>
    %387 = arith.addf %380, %386 : vector<16x16xf32>
    %c5_219 = arith.constant 5 : index
    %c0_220 = arith.constant 0 : index
    %388 = vector.load %arg13[%c5_219, %c0_220] : memref<16x16xf32, #tpu.memory_space<vmem>>, vector<1x16xf32>
    %389 = vector.broadcast %388 : vector<1x16xf32> to vector<16x16xf32>
    %390 = arith.cmpf ole, %389, %350 : vector<16x16xf32>
    %cst_221 = arith.constant 1.000000e+00 : f32
    %cst_222 = arith.constant 0.000000e+00 : f32
    %391 = vector.broadcast %cst_221 : f32 to vector<16x16xf32>
    %392 = vector.broadcast %cst_222 : f32 to vector<16x16xf32>
    %393 = arith.select %390, %391, %392 : vector<16x16xi1>, vector<16x16xf32>
    %394 = arith.addf %387, %393 : vector<16x16xf32>
    %c6_223 = arith.constant 6 : index
    %c0_224 = arith.constant 0 : index
    %395 = vector.load %arg13[%c6_223, %c0_224] : memref<16x16xf32, #tpu.memory_space<vmem>>, vector<1x16xf32>
    %396 = vector.broadcast %395 : vector<1x16xf32> to vector<16x16xf32>
    %397 = arith.cmpf ole, %396, %350 : vector<16x16xf32>
    %cst_225 = arith.constant 1.000000e+00 : f32
    %cst_226 = arith.constant 0.000000e+00 : f32
    %398 = vector.broadcast %cst_225 : f32 to vector<16x16xf32>
    %399 = vector.broadcast %cst_226 : f32 to vector<16x16xf32>
    %400 = arith.select %397, %398, %399 : vector<16x16xi1>, vector<16x16xf32>
    %401 = arith.addf %394, %400 : vector<16x16xf32>
    %c7_227 = arith.constant 7 : index
    %c0_228 = arith.constant 0 : index
    %402 = vector.load %arg13[%c7_227, %c0_228] : memref<16x16xf32, #tpu.memory_space<vmem>>, vector<1x16xf32>
    %403 = vector.broadcast %402 : vector<1x16xf32> to vector<16x16xf32>
    %404 = arith.cmpf ole, %403, %350 : vector<16x16xf32>
    %cst_229 = arith.constant 1.000000e+00 : f32
    %cst_230 = arith.constant 0.000000e+00 : f32
    %405 = vector.broadcast %cst_229 : f32 to vector<16x16xf32>
    %406 = vector.broadcast %cst_230 : f32 to vector<16x16xf32>
    %407 = arith.select %404, %405, %406 : vector<16x16xi1>, vector<16x16xf32>
    %408 = arith.addf %401, %407 : vector<16x16xf32>
    %c8_231 = arith.constant 8 : index
    %c0_232 = arith.constant 0 : index
    %409 = vector.load %arg13[%c8_231, %c0_232] : memref<16x16xf32, #tpu.memory_space<vmem>>, vector<1x16xf32>
    %410 = vector.broadcast %409 : vector<1x16xf32> to vector<16x16xf32>
    %411 = arith.cmpf ole, %410, %350 : vector<16x16xf32>
    %cst_233 = arith.constant 1.000000e+00 : f32
    %cst_234 = arith.constant 0.000000e+00 : f32
    %412 = vector.broadcast %cst_233 : f32 to vector<16x16xf32>
    %413 = vector.broadcast %cst_234 : f32 to vector<16x16xf32>
    %414 = arith.select %411, %412, %413 : vector<16x16xi1>, vector<16x16xf32>
    %415 = arith.addf %408, %414 : vector<16x16xf32>
    %cst_235 = arith.constant dense<0.000000e+00> : vector<16x4xf32>
    %416 = tpu.matmul %415, %8, %cst_235 {dimension_numbers = #tpu.dot_dimension_numbers<[1], [0], [0], [1], [0, 0, 1, 1], [], []>} : vector<16x16xf32>, vector<16x4xf32>, vector<16x4xf32> -> vector<16x4xf32>
    %417 = vector.broadcast %242 : f32 to vector<16x4xf32>
    %418 = arith.cmpf oge, %416, %417 : vector<16x4xf32>
    %cst_236 = arith.constant 1.000000e+30 : f32
    %419 = vector.broadcast %cst_236 : f32 to vector<16x4xf32>
    %420 = arith.select %418, %348, %419 : vector<16x4xi1>, vector<16x4xf32>
    %421 = vector.shape_cast %420 : vector<16x4xf32> to vector<1x16x4xf32>
    %cst_237 = arith.constant dense<0x7F800000> : vector<1xf32>
    %422 = vector.multi_reduction <minimumf>, %421, %cst_237 [1, 2] : vector<1x16x4xf32> to vector<1xf32>
    %423 = vector.shape_cast %422 : vector<1xf32> to vector<1x1x1xf32>
    %424 = vector.extract %423[0, 0, 0] : f32 from vector<1x1x1xf32>
    %425 = vector.broadcast %243 : f32 to vector<16x4xf32>
    %426 = arith.cmpf oge, %416, %425 : vector<16x4xf32>
    %cst_238 = arith.constant 1.000000e+30 : f32
    %427 = vector.broadcast %cst_238 : f32 to vector<16x4xf32>
    %428 = arith.select %426, %348, %427 : vector<16x4xi1>, vector<16x4xf32>
    %429 = vector.shape_cast %428 : vector<16x4xf32> to vector<1x16x4xf32>
    %cst_239 = arith.constant dense<0x7F800000> : vector<1xf32>
    %430 = vector.multi_reduction <minimumf>, %429, %cst_239 [1, 2] : vector<1x16x4xf32> to vector<1xf32>
    %431 = vector.shape_cast %430 : vector<1xf32> to vector<1x1x1xf32>
    %432 = vector.extract %431[0, 0, 0] : f32 from vector<1x1x1xf32>
    %433 = arith.subf %432, %424 : f32
    %434 = arith.mulf %244, %433 : f32
    %435 = arith.addf %424, %434 : f32
    %436 = vector.broadcast %435 : f32 to vector<16x4xf32>
    %437 = arith.cmpf olt, %348, %436 : vector<16x4xf32>
    %cst_240 = arith.constant 1.000000e+00 : f32
    %cst_241 = arith.constant 0.000000e+00 : f32
    %438 = vector.broadcast %cst_240 : f32 to vector<16x4xf32>
    %439 = vector.broadcast %cst_241 : f32 to vector<16x4xf32>
    %440 = arith.select %437, %438, %439 : vector<16x4xi1>, vector<16x4xf32>
    %cst_242 = arith.constant dense<0.000000e+00> : vector<16x128xf32>
    %441 = tpu.matmul %440, %5, %cst_242 {dimension_numbers = #tpu.dot_dimension_numbers<[1], [0], [0], [1], [0, 0, 1, 1], [], []>} : vector<16x4xf32>, vector<4x128xf32>, vector<16x128xf32> -> vector<16x128xf32>
    %442 = vector.broadcast %240 : vector<1x128xf32> to vector<16x128xf32>
    %443 = arith.mulf %441, %442 : vector<16x128xf32>
    %444 = vector.broadcast %238 : vector<1x128xf32> to vector<16x128xf32>
    %445 = arith.addf %444, %443 : vector<16x128xf32>
    %446 = vector.broadcast %241 : vector<1x128xf32> to vector<16x128xf32>
    %447 = arith.mulf %441, %446 : vector<16x128xf32>
    %448 = vector.broadcast %239 : vector<1x128xf32> to vector<16x128xf32>
    %449 = arith.addf %448, %447 : vector<16x128xf32>
    %450 = arith.mulf %264, %445 : vector<16x128xf32>
    %451 = arith.mulf %265, %449 : vector<16x128xf32>
    %452 = arith.subf %450, %451 : vector<16x128xf32>
    %453 = arith.mulf %264, %449 : vector<16x128xf32>
    %454 = arith.mulf %265, %445 : vector<16x128xf32>
    %455 = arith.addf %453, %454 : vector<16x128xf32>
    %cst_243 = arith.constant dense<0.000000e+00> : vector<16x128xf32>
    %456 = tpu.matmul %2, %452, %cst_243 {dimension_numbers = #tpu.dot_dimension_numbers<[1], [0], [0], [1], [0, 0, 1, 1], [], []>} : vector<16x16xf32>, vector<16x128xf32>, vector<16x128xf32> -> vector<16x128xf32>
    %457 = arith.addf %235, %456 : vector<16x128xf32>
    %cst_244 = arith.constant dense<0.000000e+00> : vector<16x128xf32>
    %458 = tpu.matmul %3, %455, %cst_244 {dimension_numbers = #tpu.dot_dimension_numbers<[1], [0], [0], [1], [0, 0, 1, 1], [], []>} : vector<16x16xf32>, vector<16x128xf32>, vector<16x128xf32> -> vector<16x128xf32>
    %459 = arith.addf %457, %458 : vector<16x128xf32>
    %c0_245 = arith.constant 0 : index
    %c0_246 = arith.constant 0 : index
    %460 = vector.load %arg11[%c0_245, %c0_246] : memref<16x128xf32, #tpu.memory_space<vmem>>, vector<16x128xf32>
    tpu.vector_store %arg11[%c0_245, %c0_246], %459 {strides = array<i32>} : memref<16x128xf32, #tpu.memory_space<vmem>>, vector<16x128xf32>,
    return
  }
}

</mosaic_0001>

<bundles_post_ra>
// kernel: tile.7
= control target key start
LH: loop header
LB: loop body
LE: loop exit
PB: predicated region body
PF: predicated region fallthrough
CT: control target
= control target key end

     0   :  { %vm62_vm0 = vcmask 1047556   ;;  %s151_s30 = smov 96   ;;  %vm64_vm1 = vcmask 261120   ;;  %s152_s6 = smov 32   ;;  %vm79_vm2 = vcmask 1048320   ;;  %vm96_vm3 = vcmask 785920   ;;  %s227_s0 = inlined_call_operand.vmem [shape: f32[12,4,32], index: 0, kind: input, shape index: {}]   ;;  %s228_s1 = inlined_call_operand.vmem [shape: f32[12,128], index: 1, kind: output, shape index: {}]  }
   0x1   :  { %v132_v0 = vld [vmem:[%s227_s0 + $0x2c] sm:$0xf]  ;;  %v133_v1 = vld [vmem:[%s227_s0 + $0x28] sm:$0xf]  ;;  %v134_v2 = vld [vmem:[%s227_s0 + $0x24] sm:$0xf] }
   0x2   :  { %8 = vst [vmem:[#allocation0 + $0x58] sm:$0xf] %v132_v0  ;;  %13 = vst [vmem:[#allocation0 + $0x50] sm:$0xf] %v133_v1  ;;  %v135_v3 = vld [vmem:[%s227_s0 + $0x20] sm:$0xf] }
   0x3   :  { %18 = vst [vmem:[#allocation0 + $0x48] sm:$0xf] %v134_v2  ;;  %v136_v4 = vld [vmem:[%s227_s0 + $0x1c] sm:$0xf]  ;;  %23 = vst [vmem:[#allocation0 + $0x40] sm:$0xf] %v135_v3 }
   0x4   :  { %28 = vst [vmem:[#allocation0 + $0x38] sm:$0xf] %v136_v4  ;;  %v137_v5 = vld [vmem:[%s227_s0 + $0x18] sm:$0xf]  ;;  %v138_v6 = vld [vmem:[%s227_s0 + $0x14] sm:$0xf] }
   0x5   :  { %v139_v7 = vld [vmem:[%s227_s0 + $0x10] sm:$0xf]  ;;  %33 = vst [vmem:[#allocation0 + $0x30] sm:$0xf] %v137_v5  ;;  %38 = vst [vmem:[#allocation0 + $0x28] sm:$0xf] %v138_v6 }
   0x6   :  { %43 = vst [vmem:[#allocation0 + $0x20] sm:$0xf] %v139_v7  ;;  %v140_v8 = vld [vmem:[%s227_s0 + $0xc] sm:$0xf]  ;;  %v141_v9 = vld [vmem:[%s227_s0 + $0x8] sm:$0xf] }
   0x7   :  { %v142_v10 = vld [vmem:[%s227_s0 + $0x4] sm:$0xf]  ;;  %48 = vst [vmem:[#allocation0 + $0x18] sm:$0xf] %v140_v8  ;;  %53 = vst [vmem:[#allocation0 + $0x10] sm:$0xf] %v141_v9 }
   0x8   :  { %57 = vst [vmem:[#allocation0 + $0x8] sm:$0xf] %v142_v10  ;;  %v58_v11 = vld [vmem:[%s227_s0] sm:$0xf]  ;;  %s150_s0 = smov 64   ;;  %vm113_vm4 = vcmask 523520  }
   0x9   :  { %59 = vst [vmem:[#allocation0] sm:$0xf] %v58_v11 }
   0xa   :  { %v99_v12 = vld [vmem:[#allocation0 + $0x42] ss:$8 sm:$0xf]   ;;  %v82_v13 = vld [vmem:[#allocation0 + $0x43] ss:$8 sm:$0xf]  }
   0xb   :  { %100 = vrot.lane.b32.xlu1 %v99_v12, %s150_s0  ;;  %83 = vrot.lane.b32.xlu0 %v82_v13, %s151_s30  ;;  %v67_v22 = vld [vmem:[#allocation0 + $0x40] ss:$8 sm:$0xf]   ;;  %v116_v25 = vld [vmem:[#allocation0 + $0x41] ss:$8 sm:$0xf]  }
   0xc   :  { %143 = vst.msk [vmem:[%s228_s1 + $0x8] sm:$0xf] %vm64_vm1, %v67_v22  }
   0xd   :  { %v91_v14 = vld [vmem:[#allocation0 + $0x2] ss:$8 sm:$0xf0]   ;;  %v74_v15 = vld [vmem:[#allocation0 + $0x3] ss:$8 sm:$0xf0]  }
   0xe   :  { %v108_v16 = vld [vmem:[#allocation0 + $0x1] ss:$8 sm:$0xf0]   ;;  %v61_v24 = vld [vmem:[#allocation0] ss:$8 sm:$0xf0]  }
  0x10   :  { %v89_v17 = vld [vmem:[#allocation0 + $0x2] ss:$8 sm:$0xf]   ;;  %v72_v18 = vld [vmem:[#allocation0 + $0x3] ss:$8 sm:$0xf]  }
  0x11   :  { %v93_v19 = vsel %vm62_vm0, %v91_v14, %v89_v17  ;;  %v76_v20 = vsel %vm62_vm0, %v74_v15, %v72_v18  ;;  %v106_v21 = vld [vmem:[#allocation0 + $0x1] ss:$8 sm:$0xf]   ;;  %v60_v23 = vld [vmem:[#allocation0] ss:$8 sm:$0xf]  }
  0x12   :  { %94 = vrot.lane.b32.xlu1 %v93_v19, %s150_s0  ;;  %77 = vrot.lane.b32.xlu0 %v76_v20, %s151_s30  ;;  %v110_v26 = vsel %vm62_vm0, %v108_v16, %v106_v21  ;;  %v63_v27 = vsel %vm62_vm0, %v61_v24, %v60_v23 }
  0x13   :  { %65 = vst.msk [vmem:[%s228_s1] sm:$0xff] %vm64_vm1, %v63_v27  }
  0x16   :  { %117 = vrot.lane.b32.xlu1 %v116_v25, %s152_s6  ;;  %111 = vrot.lane.b32.xlu0 %v110_v26, %s152_s6 }
  0x7d   :  { %v101_v28 = vpop.permute.xlu1 %100   ;;  %v84_v29 = vpop.permute.xlu0 %83  }
  0x7e   :  { %144 = vst.msk [vmem:[%s228_s1 + $0x8] sm:$0xf] %vm79_vm2, %v84_v29  }
  0x7f   :  { %145 = vst.msk [vmem:[%s228_s1 + $0x8] sm:$0xf] %vm96_vm3, %v101_v28  }
  0x84   :  { %v95_v30 = vpop.permute.xlu1 %94   ;;  %v78_v31 = vpop.permute.xlu0 %77  }
  0x85   :  { %80 = vst.msk [vmem:[%s228_s1] sm:$0xff] %vm79_vm2, %v78_v31  }
  0x86   :  { %97 = vst.msk [vmem:[%s228_s1] sm:$0xff] %vm96_vm3, %v95_v30  }
  0x88   :  { %v118_v32 = vpop.permute.xlu1 %117   ;;  %v112_v33 = vpop.permute.xlu0 %111  }
  0x89   :  { %146 = vst.msk [vmem:[%s228_s1 + $0x8] sm:$0xf] %vm113_vm4, %v118_v32   ;;  %114 = vst.msk [vmem:[%s228_s1] sm:$0xff] %vm113_vm4, %v112_v33  }

// kernel: encoder_forward.1
= control target key start
LH: loop header
LB: loop body
LE: loop exit
PB: predicated region body
PF: predicated region fallthrough
CT: control target
= control target key end

     0   :  { %16 = vsyncpa [#allocation5], 0  ;;  %s4300_s0 = inlined_call_operand.vmem [shape: f32[16,128], index: 0, kind: input, shape index: {}]   ;;  %s4301_s1 = inlined_call_operand.vmem [shape: f32[12,128], index: 1, kind: input, shape index: {}]   ;;  %s4302_s2 = inlined_call_operand.vmem [shape: f32[6], index: 2, kind: input, shape index: {}]   ;;  %s4303_s3 = inlined_call_operand.vmem [shape: f32[32,16], index: 3, kind: input, shape index: {}]   ;;  %s4304_s4 = inlined_call_operand.vmem [shape: f32[16,16], index: 4, kind: input, shape index: {}]   ;;  %s4305_s5 = inlined_call_operand.vmem [shape: f32[16,16], index: 5, kind: input, shape index: {}]   ;;  %s4306_s6 = inlined_call_operand.vmem [shape: f32[128,4], index: 6, kind: input, shape index: {}]   ;;  %s4307_s7 = inlined_call_operand.vmem [shape: f32[4,128], index: 7, kind: input, shape index: {}]   ;;  %s4308_s8 = inlined_call_operand.vmem [shape: f32[4,16], index: 8, kind: input, shape index: {}]   ;;  %s4309_s9 = inlined_call_operand.vmem [shape: f32[4,16], index: 9, kind: input, shape index: {}]   ;;  %s4310_s10 = inlined_call_operand.vmem [shape: f32[16,4], index: 10, kind: input, shape index: {}]   ;;  %s4311_s11 = inlined_call_operand.vmem [shape: f32[16,128], index: 11, kind: output, shape index: {}]  }
   0x1   :  { %s27_s19 = sshll.u32 %s4302_s2, 4  ;;  %s28_s19 = int_to_ptr.vmem [resolvable:$true] %s27_s19 }
   0x2   :  { %s3554_s20 = scalar_lea.vmem %s28_s19, 16  ;;  %p3559_p1 = scmp.lt.s32.totalorder %s28_s19, %s28_s19 }
   0x3   :  { %p3555_p0 = scmp.ne.s32.totalorder %s28_s19, %s3554_s20  ;;  %p3560_p2 = scmp.lt.s32.totalorder %s3554_s20, %s3554_s20 }
   0x5   :  { %p3561_p3 = por %p3560_p2, %p3559_p1 }
   0x7   :  { %p3562_p4 = pnand %p3561_p3, %p3555_p0 }
   0x9   :  { %3565 = shalt.err (!%p3562_p4)
}
   0xa   :  { %s3568_s21 = smov [#allocation4]  }
   0xb   :  { %30 = dma.vmem_to_smem %s28_s19, 16, %s3568_s21, [#allocation5]  }
   0xc   :  { %3566 = dma.done.wait [#allocation5], 16  }
   0xd   :  { %3567 = vsyncadd [#allocation5], 4294967280 }
   0xe   :  { %50 = sfence }
   0xf   :  { %v61_v0 = vld [vmem:[%s4306_s6] sm:$0xff]  ;;  %v62_v1 = vld [vmem:[%s4306_s6 + $0x8] sm:$0xff]  ;;  %v63_v2 = vld [vmem:[%s4306_s6 + $0x10] sm:$0xff]  ;;  %vm180_vm0 = vcmask 1043456   ;;  %vm173_vm1 = vcmask 31744   ;;  %vm437_vm2 = vcmask 130048  }
  0x10   :  { %v3642_v3 = vpack.c.bf16 %v62_v1, %v61_v0  ;;  %v64_v4 = vld [vmem:[%s4306_s6 + $0x18] sm:$0xff]  ;;  %v65_v6 = vld [vmem:[%s4306_s6 + $0x20] sm:$0xff]  ;;  %v66_v7 = vld [vmem:[%s4306_s6 + $0x28] sm:$0xff]  ;;  %s2698_s16 = sld [smem:[#allocation4 + $0x1]]  ;;  %s2699_s17 = sld [smem:[#allocation4 + $0x2]] }
  0x11   :  { %v3647_v5 = vpack.c.bf16 %v64_v4, %v63_v2  ;;  %v3658_v8 = vpack.c.bf16 %v66_v7, %v65_v6  ;;  %v3663_v9 = vld [vmem:[%s4300_s0] sm:$0xff]  ;;  %v67_v10 = vld [vmem:[%s4306_s6 + $0x30] sm:$0xff]  ;;  %v68_v11 = vld [vmem:[%s4306_s6 + $0x38] sm:$0xff] }
  0x12   :  { %3298 = vmatprep.subr.bf16.mxu0 %v3642_v3  ;;  %3007 = vmatprep.mubr.f32.mxu0 %v3663_v9  ;;  %v3674_v12 = vpack.c.bf16 %v68_v11, %v67_v10  ;;  %v69_v13 = vld [vmem:[%s4306_s6 + $0x40] sm:$0xff]  ;;  %v70_v14 = vld [vmem:[%s4306_s6 + $0x48] sm:$0xff]  ;;  %v71_v16 = vld [vmem:[%s4306_s6 + $0x50] sm:$0xff] }
  0x13   :  { %3300 = vmatpush3.bf16.msra.mxu0 %v3642_v3  ;;  %v3684_v15 = vpack.c.bf16 %v70_v14, %v69_v13  ;;  %v72_v17 = vld [vmem:[%s4306_s6 + $0x58] sm:$0xff]  ;;  %v73_v19 = vld [vmem:[%s4306_s6 + $0x60] sm:$0xff]  ;;  %v74_v20 = vld [vmem:[%s4306_s6 + $0x68] sm:$0xff]  ;;  %v82_v13 = vlaneseq }
  0x14   :  { %3302 = vmatprep.subr.bf16.mxu0 %v3647_v5  ;;  %v3694_v18 = vpack.c.bf16 %v72_v17, %v71_v16  ;;  %v3704_v21 = vpack.c.bf16 %v74_v20, %v73_v19  ;;  %v75_v22 = vld [vmem:[%s4306_s6 + $0x70] sm:$0xff]  ;;  %v76_v23 = vld [vmem:[%s4306_s6 + $0x78] sm:$0xff]  ;;  %v3722_v25 = vld [vmem:[%s4300_s0 + $0x8] sm:$0xff] }
  0x15   :  { %v3714_v24 = vpack.c.bf16 %v76_v23, %v75_v22  ;;  %v3728_v26 = vld [vmem:[%s4307_s7] sm:$0xf]  ;;  %v3794_v57 = vld [vmem:[%s4303_s3 + $0x8] sm:$0xff]  ;;  %v3799_v58 = vld [vmem:[%s4303_s3 + $0x10] sm:$0xff]  ;;  %v83_v14 = vshrl.u32 %v82_v13, 7 }
  0x16   :  { %3010 = vmatprep.subr.msk.mxu1 %vm180_vm0, %v3728_v26  ;;  %v3781_v41 = vld [vmem:[%s4303_s3] sm:$0xff]  ;;  %v3808_v59 = vld [vmem:[%s4303_s3 + $0x18] sm:$0xff] }
  0x17   :  { %3304 = vmatpush3.bf16.msra.mxu0 %v3647_v5  ;;  %3011 = vmatpush3.msk.msra.mxu1 %vm180_vm0, %v3728_v26  ;;  %v2706_v47 = vld [vmem:[%s4301_s1] ss:$0 sm:$0xff]  ;;  %v2707_v50 = vld [vmem:[%s4301_s1 + $0x1] ss:$0 sm:$0xff]  ;;  %v3847_v16 = vadd.s32 8, %v83_v14 }
  0x18   :  { %3306 = vmatprep.subr.bf16.mxu0 %v3658_v8  ;;  %3330 = vmatprep.subr.bf16.mxu1 %v3642_v3  ;;  %v3834_v10 = vld [vmem:[%s4308_s8] sm:$0xf] }
  0x19   :  { %v3843_v11 = vld [vmem:[%s4309_s9] sm:$0xf]  ;;  %vm86_vm3 = vcmp.ge.s32.totalorder %v3847_v16, 9 }
  0x1a   :  { %v4205_v16 = vld [vmem:[%s4307_s7] sm:$0xf]  ;;  %s2749_s7 = sld [smem:[#allocation4 + $0x3]] }
  0x1b   :  { %3308 = vmatpush3.bf16.msra.mxu0 %v3658_v8 }
  0x1c   :  { %3310 = vmatprep.subr.bf16.mxu0 %v3674_v12 }
  0x1f   :  { %3312 = vmatpush3.bf16.msra.mxu0 %v3674_v12 }
  0x20   :  { %3314 = vmatprep.subr.bf16.mxu0 %v3684_v15 }
  0x23   :  { %3316 = vmatpush3.bf16.msra.mxu0 %v3684_v15 }
  0x24   :  { %3318 = vmatprep.subr.bf16.mxu0 %v3694_v18 }
  0x27   :  { %3320 = vmatpush3.bf16.msra.mxu0 %v3694_v18 }
  0x28   :  { %3322 = vmatprep.subr.bf16.mxu0 %v3704_v21 }
  0x2b   :  { %3324 = vmatpush3.bf16.msra.mxu0 %v3704_v21 }
  0x2c   :  { %3326 = vmatprep.subr.bf16.mxu0 %v3714_v24 }
  0x2f   :  { %3328 = vmatpush3.bf16.msra.mxu0 %v3714_v24 }
  0x30   :  { %3050 = vmatprep.subr.msk.mxu0 %vm180_vm0, %v3728_v26 }
  0x32   :  { %3008 = vmatmul.mubr.f32.vlgmr.msra.gmra.mrb[0].mxu0 %v3722_v25 }
  0x33   :  { %3051 = vmatpush3.msk.msra.mxu0 %vm180_vm0, %v3728_v26 }
  0x34   :  { %3366 = vmatprep.subr.bf16.mxu0 %v3642_v3 }
 0x105   :  { %v3009_v27 = vpop.f32.mrb[0].mxu0 }
 0x106   :  { %v162_v28 = vpop.f32.mrb[1].mxu0  ;;  %v172_v30 = vmul.f32 0.03125, %v3009_v27 }
 0x107   :  { %v171_v29 = vmul.f32 0.03125, %v162_v28 }
 0x109   :  { %3012 = vmatprep.mubr.msk.f32.mxu1 %vm173_vm1, %v171_v29  ;;  %v3569_v29 = vmov 0.0  }
 0x10a   :  { %3013 = vmatmul.mubr.msk.f32.vlgmr.msra.gmra.mrb[0].mxu1 %vm173_vm1, %v172_v30 }
 0x10b   :  { %3332 = vmatpush3.bf16.msra.mxu1 %v3642_v3 }
 0x10c   :  { %3334 = vmatprep.subr.bf16.mxu1 %v3647_v5 }
 0x10f   :  { %3336 = vmatpush3.bf16.msra.mxu1 %v3647_v5 }
 0x110   :  { %3338 = vmatprep.subr.bf16.mxu1 %v3658_v8 }
 0x113   :  { %3340 = vmatpush3.bf16.msra.mxu1 %v3658_v8 }
 0x114   :  { %3342 = vmatprep.subr.bf16.mxu1 %v3674_v12 }
 0x117   :  { %3344 = vmatpush3.bf16.msra.mxu1 %v3674_v12 }
 0x118   :  { %3346 = vmatprep.subr.bf16.mxu1 %v3684_v15 }
 0x11b   :  { %3348 = vmatpush3.bf16.msra.mxu1 %v3684_v15 }
 0x11c   :  { %3350 = vmatprep.subr.bf16.mxu1 %v3694_v18 }
 0x11f   :  { %3352 = vmatpush3.bf16.msra.mxu1 %v3694_v18 }
 0x120   :  { %3354 = vmatprep.subr.bf16.mxu1 %v3704_v21 }
 0x123   :  { %3356 = vmatpush3.bf16.msra.mxu1 %v3704_v21 }
 0x124   :  { %3358 = vmatprep.subr.bf16.mxu1 %v3714_v24 }
 0x127   :  { %3360 = vmatpush3.bf16.msra.mxu1 %v3714_v24 }
 0x1dd   :  { %v3014_v31 = vpop.f32.mrb[0].mxu1 }
 0x1de   :  { %v260_v32 = vsub.f32 %v3722_v25, %v3014_v31  ;;  %v250_v33 = vpop.f32.mrb[1].mxu1 }
 0x1df   :  { %v259_v34 = vsub.f32 %v3663_v9, %v250_v33 }
 0x1e0   :  { %v262_v36 = vmul.f32 %v260_v32, %v260_v32 }
 0x1e1   :  { %v261_v35 = vmul.f32 %v259_v34, %v259_v34 }
 0x1e3   :  { %3047 = vmatprep.mubr.f32.mxu1 %v261_v35 }
 0x1e4   :  { %3048 = vmatmul.mubr.f32.vlgmr.msra.gmra.mrb[2].mxu1 %v262_v36 }
 0x1e5   :  { %3059 = vmatprep.mubr.msk.f32.mxu1 %vm437_vm2, %v3781_v41 }
 0x2b7   :  { %v3049_v37 = vpop.f32.mrb[2].mxu1 }
 0x2b8   :  { %v329_v38 = vpop.f32.mrb[3].mxu1  ;;  %v339_v40 = vmul.f32 0.03125, %v3049_v37 }
 0x2b9   :  { %v338_v39 = vmul.f32 0.03125, %v329_v38 }
 0x2bb   :  { %3052 = vmatprep.mubr.msk.f32.mxu0 %vm173_vm1, %v338_v39 }
 0x2bc   :  { %3053 = vmatmul.mubr.msk.f32.vlgmr.msra.gmra.mrb[2].mxu0 %vm173_vm1, %v339_v40 }
 0x2bd   :  { %3368 = vmatpush3.bf16.msra.mxu0 %v3642_v3 }
 0x2be   :  { %3370 = vmatprep.subr.bf16.mxu0 %v3647_v5 }
 0x2c1   :  { %3372 = vmatpush3.bf16.msra.mxu0 %v3647_v5 }
 0x2c2   :  { %3374 = vmatprep.subr.bf16.mxu0 %v3658_v8 }
 0x2c5   :  { %3376 = vmatpush3.bf16.msra.mxu0 %v3658_v8 }
 0x2c6   :  { %3378 = vmatprep.subr.bf16.mxu0 %v3674_v12 }
 0x2c9   :  { %3380 = vmatpush3.bf16.msra.mxu0 %v3674_v12 }
 0x2ca   :  { %3382 = vmatprep.subr.bf16.mxu0 %v3684_v15 }
 0x2cd   :  { %3384 = vmatpush3.bf16.msra.mxu0 %v3684_v15 }
 0x2ce   :  { %3386 = vmatprep.subr.bf16.mxu0 %v3694_v18 }
 0x2d1   :  { %3388 = vmatpush3.bf16.msra.mxu0 %v3694_v18 }
 0x2d2   :  { %3390 = vmatprep.subr.bf16.mxu0 %v3704_v21 }
 0x2d5   :  { %3392 = vmatpush3.bf16.msra.mxu0 %v3704_v21 }
 0x2d6   :  { %3394 = vmatprep.subr.bf16.mxu0 %v3714_v24 }
 0x2d9   :  { %3396 = vmatpush3.bf16.msra.mxu0 %v3714_v24 }
 0x2da   :  { %3171 = vmatprep.subr.msk.mxu0 %vm180_vm0, %v3728_v26 }
 0x38f   :  { %v3054_v42 = vpop.f32.mrb[2].mxu0 }
 0x390   :  { %v418_v43 = vadd.f32 1e-05, %v3054_v42  ;;  %v412_v44 = vpop.f32.mrb[3].mxu0 }
 0x391   :  { %v413_v45 = vadd.f32 1e-05, %v412_v44 }
 0x392   :  { %3539 = vrsqrt.f32 %v418_v43 }
 0x393   :  { %3541 = vrsqrt.f32 %v413_v45 }
 0x39c   :  { %v3540_v46 = vpop.eup %3539 }
 0x39d   :  { %v3542_v48 = vpop.eup %3541  ;;  %v424_v49 = vmul.f32 %v3540_v46, %v260_v32 }
 0x39e   :  { %v423_v51 = vmul.f32 %v3542_v48, %v259_v34 }
 0x39f   :  { %v430_v52 = vmul.f32 %v2706_v47, %v424_v49 }
 0x3a0   :  { %v429_v53 = vmul.f32 %v2706_v47, %v423_v51 }
 0x3a1   :  { %v436_v54 = vadd.f32 %v2707_v50, %v430_v52 }
 0x3a2   :  { %v435_v55 = vadd.f32 %v2707_v50, %v429_v53 }
 0x3a4   :  { %v3361_v56 = vpack.c.bf16 %v436_v54, %v435_v55 }
 0x3a6   :  { %3362 = vmatprep.subr.bf16.mxu1 %v3361_v56 }
 0x3a7   :  { %3364 = vmatpush3.bf16.msra.mxu1 %v3361_v56 }
 0x3a8   :  { %3100 = vmatprep.subr.msk.mxu1 %vm180_vm0, %v3834_v10 }
 0x3aa   :  { %3060 = vmatmul.mubr.msk.f32.vlgmr.msra.gmra.mrb[4].mxu1 %vm437_vm2, %v3794_v57 }
 0x3ab   :  { %3062 = vmatprep.mubr.msk.f32.mxu1 %vm437_vm2, %v3799_v58  ;;  %3101 = vmatpush3.msk.msra.mxu1 %vm180_vm0, %v3834_v10 }
 0x3ac   :  { %3105 = vmatprep.subr.msk.mxu1 %vm180_vm0, %v3843_v11 }
 0x3ae   :  { %3063 = vmatmul.mubr.msk.f32.gmra.mrb[6].mxu1 %vm437_vm2, %v3808_v59 }
 0x47d   :  { %v3812_v60 = vpop.f32.mrb[4].mxu1 }
 0x47e   :  { %v3814_v61 = vpop.f32.mrb[5].mxu1  ;;  %v536_v63 = vmul.f32 %v3812_v60, %v3812_v60 }
 0x47f   :  { %v535_v2 = vmul.f32 %v3814_v61, %v3814_v61 }
 0x481   :  { %v3816_v62 = vpop.f32.mrb[6].mxu1 }
 0x482   :  { %v538_v0 = vmul.f32 %v3816_v62, %v3816_v62  ;;  %v3822_v1 = vpop.f32.mrb[7].mxu1 }
 0x483   :  { %v537_v4 = vmul.f32 %v3822_v1, %v3822_v1 }
 0x484   :  { %v540_v6 = vadd.f32 %v538_v0, %v536_v63 }
 0x485   :  { %v539_v7 = vadd.f32 %v537_v4, %v535_v2 }
 0x487   :  { %3097 = vmatprep.mubr.f32.mxu0 %v539_v7 }
 0x488   :  { %3098 = vmatmul.mubr.f32.vlgmr.msra.gmra.mrb[4].mxu0 %v540_v6 }
 0x489   :  { %3172 = vmatpush3.msk.msra.mxu0 %vm180_vm0, %v3728_v26 }
 0x48a   :  { %3442 = vmatprep.subr.bf16.mxu0 %v3642_v3 }
 0x55b   :  { %v3850_v17 = vpop.f32.mrb[4].mxu0 }
 0x55c   :  { %v3855_v19 = vsel %vm86_vm3, 1e+30, %v3850_v17  ;;  %v3857_v20 = vpop.f32.mrb[5].mxu0 }
 0x55d   :  { %619 = vst.msk [vmem:[#allocation2 + $0x8] sm:$0xff] %vm173_vm1, %v3855_v19  ;;  %618 = vst.msk [vmem:[#allocation2] sm:$0xff] %vm173_vm1, %v3857_v20 }
 0x564   :  { %v2712_v22 = vld [vmem:[#allocation2] ss:$0 sm:$0xff]  ;;  %v2713_v23 = vld [vmem:[#allocation2 + $0x1] ss:$0 sm:$0xff]  ;;  %v2714_v27 = vld [vmem:[#allocation2 + $0x2] ss:$0 sm:$0xff] }
 0x565   :  { %vm625_vm4 = vcmp.le.f32.partialorder %v2712_v22, %v3857_v20  ;;  %vm626_vm5 = vcmp.le.f32.partialorder %v2712_v22, %v3855_v19  ;;  %vm636_vm6 = vcmp.le.f32.partialorder %v2713_v23, %v3857_v20  ;;  %v2715_v28 = vld [vmem:[#allocation2 + $0x3] ss:$0 sm:$0xff]  ;;  %vm637_vm7 = vcmp.le.f32.partialorder %v2713_v23, %v3855_v19  ;;  %v2716_v34 = vld [vmem:[#allocation2 + $0x4] ss:$0 sm:$0xff]  ;;  %v2717_v38 = vld [vmem:[#allocation2 + $0x5] ss:$0 sm:$0xff] }
 0x566   :  { %v627_v30 = vsel %vm625_vm4, 1.0, %v3569_v29  ;;  %v628_v31 = vsel %vm626_vm5, 1.0, %v3569_v29  ;;  %v638_v32 = vsel %vm636_vm6, 1.0, %v3569_v29  ;;  %v639_v33 = vsel %vm637_vm7, 1.0, %v3569_v29  ;;  %v2718_v44 = vld [vmem:[#allocation2 + $0x6] ss:$0 sm:$0xff] }
 0x567   :  { %vm647_vm8 = vcmp.le.f32.partialorder %v2714_v27, %v3857_v20  ;;  %vm648_vm9 = vcmp.le.f32.partialorder %v2714_v27, %v3855_v19  ;;  %v640_v35 = vadd.f32 %v638_v32, %v627_v30  ;;  %vm658_vm10 = vcmp.le.f32.partialorder %v2715_v28, %v3857_v20  ;;  %v2719_v49 = vld [vmem:[#allocation2 + $0x7] ss:$0 sm:$0xff]  ;;  %v2720_v52 = vld [vmem:[#allocation2 + $0x8] ss:$0 sm:$0xff] }
 0x568   :  { %v649_v36 = vsel %vm647_vm8, 1.0, %v3569_v29  ;;  %v641_v37 = vadd.f32 %v639_v33, %v628_v31  ;;  %vm659_vm11 = vcmp.le.f32.partialorder %v2715_v28, %v3855_v19  ;;  %vm669_vm12 = vcmp.le.f32.partialorder %v2716_v34, %v3857_v20 }
 0x569   :  { %v651_v39 = vadd.f32 %v649_v36, %v640_v35  ;;  %v650_v40 = vsel %vm648_vm9, 1.0, %v3569_v29  ;;  %v660_v42 = vsel %vm658_vm10, 1.0, %v3569_v29  ;;  %vm670_vm13 = vcmp.le.f32.partialorder %v2716_v34, %v3855_v19 }
 0x56a   :  { %v652_v43 = vadd.f32 %v650_v40, %v641_v37  ;;  %v661_v45 = vsel %vm659_vm11, 1.0, %v3569_v29  ;;  %vm680_vm14 = vcmp.le.f32.partialorder %v2717_v38, %v3857_v20  ;;  %v671_v48 = vsel %vm669_vm12, 1.0, %v3569_v29 }
 0x56b   :  { %v662_v46 = vadd.f32 %v660_v42, %v651_v39  ;;  %vm681_vm15 = vcmp.le.f32.partialorder %v2717_v38, %v3855_v19  ;;  %v672_v50 = vsel %vm670_vm13, 1.0, %v3569_v29  ;;  %vm691_vm4 = vcmp.le.f32.partialorder %v2718_v44, %v3857_v20 }
 0x56c   :  { %v663_v47 = vadd.f32 %v661_v45, %v652_v43  ;;  %v682_v54 = vsel %vm680_vm14, 1.0, %v3569_v29  ;;  %vm692_vm5 = vcmp.le.f32.partialorder %v2718_v44, %v3855_v19  ;;  %v683_v55 = vsel %vm681_vm15, 1.0, %v3569_v29 }
 0x56d   :  { %v673_v51 = vadd.f32 %v671_v48, %v662_v46  ;;  %vm702_vm6 = vcmp.le.f32.partialorder %v2719_v49, %v3857_v20  ;;  %v693_v0 = vsel %vm691_vm4, 1.0, %v3569_v29  ;;  %vm703_vm7 = vcmp.le.f32.partialorder %v2719_v49, %v3855_v19 }
 0x56e   :  { %v674_v53 = vadd.f32 %v672_v50, %v663_v47  ;;  %v694_v2 = vsel %vm692_vm5, 1.0, %v3569_v29  ;;  %vm713_vm8 = vcmp.le.f32.partialorder %v2720_v52, %v3857_v20  ;;  %vm714_vm9 = vcmp.le.f32.partialorder %v2720_v52, %v3855_v19 }
 0x56f   :  { %v684_v56 = vadd.f32 %v682_v54, %v673_v51  ;;  %v704_v7 = vsel %vm702_vm6, 1.0, %v3569_v29  ;;  %v705_v13 = vsel %vm703_vm7, 1.0, %v3569_v29  ;;  %v715_v23 = vsel %vm713_vm8, 1.0, %v3569_v29 }
 0x570   :  { %v685_v63 = vadd.f32 %v683_v55, %v674_v53  ;;  %v716_v27 = vsel %vm714_vm9, 1.0, %v3569_v29 }
 0x571   :  { %v695_v4 = vadd.f32 %v693_v0, %v684_v56 }
 0x572   :  { %v696_v6 = vadd.f32 %v694_v2, %v685_v63 }
 0x573   :  { %v706_v14 = vadd.f32 %v704_v7, %v695_v4 }
 0x574   :  { %v707_v22 = vadd.f32 %v705_v13, %v696_v6 }
 0x575   :  { %v717_v28 = vadd.f32 %v715_v23, %v706_v14 }
 0x576   :  { %v718_v30 = vadd.f32 %v716_v27, %v707_v22 }
 0x577   :  { %vm719_vm10 = vcmp.ge.f32.partialorder %v717_v28, 5.0 }
 0x578   :  { %vm720_vm11 = vcmp.ge.f32.partialorder %v718_v30, 5.0  ;;  %v721_v31 = vsel %vm719_vm10, %v3857_v20, 1e+30 }
 0x579   :  { %v722_v32 = vsel %vm720_vm11, %v3855_v19, 1e+30  ;;  %v723_v33 = vsel %vm173_vm1, %v721_v31, inf }
 0x57a   :  { %v724_v34 = vsel %vm173_vm1, %v722_v32, inf }
 0x57b   :  { %v725_v35 = vmin.f32 %v723_v33, %v724_v34 }
 0x57d   :  { %v726_v36 = vrot.slane %v725_v35, 4 }
 0x57f   :  { %v727_v37 = vmin.f32 %v725_v35, %v726_v36 }
 0x581   :  { %v728_v38 = vrot.slane %v727_v37, 2 }
 0x583   :  { %v729_v39 = vmin.f32 %v727_v37, %v728_v38 }
 0x585   :  { %v730_v40 = vrot.slane %v729_v39, 1 }
 0x587   :  { %v731_v42 = vmin.f32 %v729_v39, %v730_v40 }
 0x589   :  { %v732_v43 = vadd.f32 1e-06, %v731_v42 }
 0x58b   :  { %3543 = vrcp.f32 %v732_v43 }
 0x595   :  { %v3544_v44 = vpop.eup %3543 }
 0x596   :  { %v3904_v45 = vmul.f32 %v3544_v44, %v3857_v20  ;;  %v735_v46 = vmul.f32 %v3544_v44, %v3850_v17  ;;  %v80_v17 = vld [vmem:[%s4310_s10] sm:$0xff]  ;;  %v81_v20 = vld [vmem:[%s4310_s10 + $0x8] sm:$0xff]  ;;  %s93_s10 = sld [smem:[#allocation4]] }
 0x597   :  { %v3927_v47 = vpack.c.bf16 %v81_v20, %v80_v17 }
 0x598   :  { %3102 = vmatprep.mubr.msk.f32.mxu1 %vm173_vm1, %v3904_v45  ;;  %v3911_v19 = vsel %vm86_vm3, 1e+30, %v735_v46 }
 0x599   :  { %3103 = vmatmul.mubr.msk.f32.vlgmr.msra.gmra.mrb[8].mxu1 %vm173_vm1, %v3911_v19 }
 0x59a   :  { %3107 = vmatprep.mubr.msk.f32.mxu1 %vm173_vm1, %v3904_v45  ;;  %3106 = vmatpush3.msk.msra.mxu1 %vm180_vm0, %v3843_v11 }
 0x59b   :  { %3398 = vmatprep.subr.bf16.mxu1 %v3927_v47 }
 0x59d   :  { %3108 = vmatmul.mubr.msk.f32.vlgmr.msra.gmra.mrb[10].mxu1 %vm173_vm1, %v3911_v19 }
 0x59e   :  { %3400 = vmatpush3.bf16.msra.mxu1 %v3927_v47 }
 0x59f   :  { %3117 = vmatprep.subr.msk.mxu1 %vm180_vm0, %v3728_v26 }
 0x66c   :  { %v3104_v48 = vpop.f32.mrb[8].mxu1 }
 0x66d   :  { %901 = vst.msk [vmem:[#allocation3 + $0x8] sm:$0xff] %vm437_vm2, %v3104_v48  ;;  %v813_v49 = vpop.f32.mrb[9].mxu1 }
 0x66e   :  { %900 = vst.msk [vmem:[#allocation3] sm:$0xff] %vm437_vm2, %v813_v49 }
 0x670   :  { %v3935_v50 = vpop.f32.mrb[10].mxu1 }
 0x671   :  { %v891_v51 = vpop.f32.mrb[11].mxu1 }
 0x674   :  { %v2735_v36 = vld [vmem:[#allocation3 + $0x8] ss:$0 sm:$0xff] }
 0x675   :  { %v2727_v52 = vld [vmem:[#allocation3] ss:$0 sm:$0xff]  ;;  %v2728_v53 = vld [vmem:[#allocation3 + $0x1] ss:$0 sm:$0xff]  ;;  %v2729_v54 = vld [vmem:[#allocation3 + $0x2] ss:$0 sm:$0xff] }
 0x676   :  { %vm908_vm12 = vcmp.le.f32.partialorder %v2727_v52, %v3935_v50  ;;  %vm919_vm13 = vcmp.le.f32.partialorder %v2728_v53, %v3935_v50  ;;  %vm907_vm14 = vcmp.le.f32.partialorder %v2727_v52, %v891_v51  ;;  %vm918_vm15 = vcmp.le.f32.partialorder %v2728_v53, %v891_v51  ;;  %v2730_v55 = vld [vmem:[#allocation3 + $0x3] ss:$0 sm:$0xff]  ;;  %v2731_v2 = vld [vmem:[#allocation3 + $0x4] ss:$0 sm:$0xff]  ;;  %v2732_v13 = vld [vmem:[#allocation3 + $0x5] ss:$0 sm:$0xff] }
 0x677   :  { %v910_v56 = vsel %vm908_vm12, 1.0, %v3569_v29  ;;  %v909_v63 = vsel %vm907_vm14, 1.0, %v3569_v29  ;;  %v920_v0 = vsel %vm918_vm15, 1.0, %v3569_v29  ;;  %v921_v4 = vsel %vm919_vm13, 1.0, %v3569_v29  ;;  %v2733_v23 = vld [vmem:[#allocation3 + $0x6] ss:$0 sm:$0xff] }
 0x678   :  { %v922_v6 = vadd.f32 %v920_v0, %v909_v63  ;;  %vm929_vm4 = vcmp.le.f32.partialorder %v2729_v54, %v891_v51  ;;  %vm940_vm5 = vcmp.le.f32.partialorder %v2730_v55, %v891_v51  ;;  %vm951_vm6 = vcmp.le.f32.partialorder %v2731_v2, %v891_v51  ;;  %v2734_v31 = vld [vmem:[#allocation3 + $0x7] ss:$0 sm:$0xff] }
 0x679   :  { %v931_v7 = vsel %vm929_vm4, 1.0, %v3569_v29  ;;  %v942_v22 = vsel %vm940_vm5, 1.0, %v3569_v29  ;;  %v923_v27 = vadd.f32 %v921_v4, %v910_v56  ;;  %vm962_vm7 = vcmp.le.f32.partialorder %v2732_v13, %v891_v51 }
 0x67a   :  { %v933_v14 = vadd.f32 %v931_v7, %v922_v6  ;;  %vm930_vm8 = vcmp.le.f32.partialorder %v2729_v54, %v3935_v50  ;;  %vm941_vm9 = vcmp.le.f32.partialorder %v2730_v55, %v3935_v50  ;;  %v953_v30 = vsel %vm951_vm6, 1.0, %v3569_v29 }
 0x67b   :  { %v932_v32 = vsel %vm930_vm8, 1.0, %v3569_v29  ;;  %vm973_vm10 = vcmp.le.f32.partialorder %v2733_v23, %v891_v51  ;;  %vm952_vm11 = vcmp.le.f32.partialorder %v2731_v2, %v3935_v50  ;;  %v964_v35 = vsel %vm962_vm7, 1.0, %v3569_v29 }
 0x67c   :  { %v944_v28 = vadd.f32 %v942_v22, %v933_v14  ;;  %v934_v34 = vadd.f32 %v932_v32, %v923_v27  ;;  %v943_v37 = vsel %vm941_vm9, 1.0, %v3569_v29  ;;  %vm984_vm12 = vcmp.le.f32.partialorder %v2734_v31, %v891_v51 }
 0x67d   :  { %vm963_vm13 = vcmp.le.f32.partialorder %v2732_v13, %v3935_v50  ;;  %v975_v40 = vsel %vm973_vm10, 1.0, %v3569_v29  ;;  %v954_v42 = vsel %vm952_vm11, 1.0, %v3569_v29  ;;  %vm995_vm14 = vcmp.le.f32.partialorder %v2735_v36, %v891_v51 }
 0x67e   :  { %v955_v33 = vadd.f32 %v953_v30, %v944_v28  ;;  %v945_v39 = vadd.f32 %v943_v37, %v934_v34  ;;  %vm974_vm15 = vcmp.le.f32.partialorder %v2733_v23, %v3935_v50  ;;  %v986_v46 = vsel %vm984_vm12, 1.0, %v3569_v29 }
 0x67f   :  { %v965_v17 = vsel %vm963_vm13, 1.0, %v3569_v29  ;;  %vm985_vm4 = vcmp.le.f32.partialorder %v2734_v31, %v3935_v50  ;;  %v997_v49 = vsel %vm995_vm14, 1.0, %v3569_v29  ;;  %v976_v52 = vsel %vm974_vm15, 1.0, %v3569_v29 }
 0x680   :  { %v966_v38 = vadd.f32 %v964_v35, %v955_v33  ;;  %v956_v44 = vadd.f32 %v954_v42, %v945_v39  ;;  %vm996_vm5 = vcmp.le.f32.partialorder %v2735_v36, %v3935_v50  ;;  %v987_v51 = vsel %vm985_vm4, 1.0, %v3569_v29 }
 0x681   :  { %v998_v56 = vsel %vm996_vm5, 1.0, %v3569_v29  ;;  %v1082_v0 = vstv %s93_s10  ;;  %v1099_v2 = vstv %s2698_s16 }
 0x682   :  { %v977_v43 = vadd.f32 %v975_v40, %v966_v38  ;;  %v967_v48 = vadd.f32 %v965_v17, %v956_v44 }
 0x684   :  { %v988_v20 = vadd.f32 %v986_v46, %v977_v43  ;;  %v978_v54 = vadd.f32 %v976_v52, %v967_v48  ;;  %v3985_v52 = vld [vmem:[%s4304_s4] sm:$0xff] }
 0x686   :  { %v999_v53 = vadd.f32 %v997_v49, %v988_v20  ;;  %v989_v55 = vadd.f32 %v987_v51, %v978_v54  ;;  %v2744_v54 = vld [vmem:[%s4301_s1 + $0x3] ss:$0 sm:$0xff] }
 0x688   :  { %3114 = vmatprep.mubr.msk.f32.mxu1 %vm437_vm2, %v999_v53  ;;  %v1000_v63 = vadd.f32 %v998_v56, %v989_v55  ;;  %v2742_v53 = vld [vmem:[%s4301_s1 + $0x2] ss:$0 sm:$0xff] }
 0x68a   :  { %3115 = vmatmul.mubr.msk.f32.vlgmr.msra.gmra.mrb[12].mxu1 %vm437_vm2, %v1000_v63 }
 0x68b   :  { %3118 = vmatpush3.msk.msra.mxu1 %vm180_vm0, %v3728_v26 }
 0x75d   :  { %v3116_v4 = vpop.f32.mrb[12].mxu1 }
 0x75e   :  { %vm1084_vm6 = vcmp.ge.f32.partialorder %v3116_v4, %v1082_v0  ;;  %vm1101_vm7 = vcmp.ge.f32.partialorder %v3116_v4, %v1099_v2  ;;  %v1073_v50 = vpop.f32.mrb[13].mxu1 }
 0x75f   :  { %v1103_v6 = vsel %vm1101_vm7, %v3911_v19, 1e+30  ;;  %vm1083_vm8 = vcmp.ge.f32.partialorder %v1073_v50, %v1082_v0  ;;  %vm1100_vm9 = vcmp.ge.f32.partialorder %v1073_v50, %v1099_v2  ;;  %v1086_v7 = vsel %vm1084_vm6, %v3911_v19, 1e+30 }
 0x760   :  { %v1102_v13 = vsel %vm1100_vm9, %v3904_v45, 1e+30  ;;  %v1085_v14 = vsel %vm1083_vm8, %v3904_v45, 1e+30  ;;  %v1088_v22 = vsel %vm173_vm1, %v1086_v7, inf  ;;  %v1105_v23 = vsel %vm173_vm1, %v1103_v6, inf }
 0x761   :  { %v1087_v27 = vsel %vm173_vm1, %v1085_v14, inf  ;;  %v1104_v28 = vsel %vm173_vm1, %v1102_v13, inf }
 0x762   :  { %v1089_v30 = vmin.f32 %v1087_v27, %v1088_v22  ;;  %v1106_v31 = vmin.f32 %v1104_v28, %v1105_v23 }
 0x764   :  { %1090 = vmin.xlane.f32.xlu0 %v1089_v30 }
 0x768   :  { %1107 = vmin.xlane.f32.xlu0 %v1106_v31 }
 0x7f1   :  { %v1091_v32 = vpop.xlane.xlu0 %1090 }
 0x7f2   :  { %v1092_v33 = vrot.slane %v1091_v32, 4 }
 0x7f4   :  { %v1093_v34 = vmin.f32 %v1091_v32, %v1092_v33 }
 0x7f5   :  { %v1108_v35 = vpop.xlane.xlu0 %1107 }
 0x7f6   :  { %v1094_v36 = vrot.slane %v1093_v34, 2  ;;  %v1109_v37 = vrot.slane %v1108_v35, 4 }
 0x7f8   :  { %v1110_v38 = vmin.f32 %v1108_v35, %v1109_v37  ;;  %v1095_v39 = vmin.f32 %v1093_v34, %v1094_v36 }
 0x7fa   :  { %v1111_v40 = vrot.slane %v1110_v38, 2  ;;  %v1096_v42 = vrot.slane %v1095_v39, 1 }
 0x7fc   :  { %v1112_v43 = vmin.f32 %v1110_v38, %v1111_v40  ;;  %v1097_v44 = vmin.f32 %v1095_v39, %v1096_v42 }
 0x7fe   :  { %3529 = vpush %v1097_v44  ;;  %v1113_v46 = vrot.slane %v1112_v43, 1 }
 0x800   :  { %v1114_v17 = vmin.f32 %v1112_v43, %v1113_v46 }
 0x802   :  { %3531 = vpush %v1114_v17 }
 0x82f   :  { %s3530_s6 = spop %3529 }
 0x833   :  { %s3532_s18 = spop %3531 }
 0x834   :  { %s1116_s19 = ssub.f32 %s3532_s18, %s3530_s6  ;;  %s2751_s18 = sld [smem:[#allocation4 + $0x5]] }
 0x836   :  { %s1117_s20 = smul.f32 %s2699_s17, %s1116_s19 }
 0x838   :  { %s1118_s21 = sadd.f32 %s3530_s6, %s1117_s20  ;;  %s2750_s6 = sld [smem:[#allocation4 + $0x4]] }
 0x83a   :  { %v1119_v20 = vstv %s1118_s21 }
 0x83b   :  { %vm1121_vm10 = vcmp.lt.f32.partialorder %v3911_v19, %v1119_v20  ;;  %vm1120_vm11 = vcmp.lt.f32.partialorder %v3904_v45, %v1119_v20  ;;  %v2741_v45 = vld [vmem:[%s4301_s1 + $0x4] ss:$0 sm:$0xff]  ;;  %v2743_v19 = vld [vmem:[%s4301_s1 + $0x5] ss:$0 sm:$0xff] }
 0x83c   :  { %v1122_v48 = vsel %vm1120_vm11, 1.0, %v3569_v29  ;;  %v1123_v49 = vsel %vm1121_vm10, 1.0, %v3569_v29 }
 0x83d   :  { %3119 = vmatprep.mubr.msk.f32.mxu1 %vm173_vm1, %v1122_v48 }
 0x83e   :  { %3120 = vmatmul.mubr.msk.f32.vlgmr.msra.gmra.mrb[14].mxu1 %vm173_vm1, %v1123_v49 }
 0x83f   :  { %3126 = vmatprep.mubr.msk.f32.mxu1 %vm437_vm2, %v3985_v52 }
 0x911   :  { %v3121_v51 = vpop.f32.mrb[14].mxu1 }
 0x912   :  { %v1210_v55 = vmul.f32 %v3121_v51, %v2741_v45  ;;  %v1222_v56 = vmul.f32 %v3121_v51, %v2743_v19  ;;  %v1196_v63 = vpop.f32.mrb[15].mxu1 }
 0x913   :  { %v1209_v0 = vmul.f32 %v2741_v45, %v1196_v63  ;;  %v1221_v2 = vmul.f32 %v2743_v19, %v1196_v63 }
 0x914   :  { %v1216_v4 = vadd.f32 %v2742_v53, %v1210_v55  ;;  %v1228_v50 = vadd.f32 %v2744_v54, %v1222_v56 }
 0x915   :  { %v1215_v6 = vadd.f32 %v2742_v53, %v1209_v0  ;;  %v1227_v7 = vadd.f32 %v2744_v54, %v1221_v2  ;;  %v2759_v54 = vld [vmem:[%s4301_s1 + $0x7] ss:$0 sm:$0xff] }
 0x916   :  { %v1230_v13 = vmul.f32 %v3812_v60, %v1216_v4  ;;  %v1232_v14 = vmul.f32 %v3816_v62, %v1228_v50  ;;  %v1236_v22 = vmul.f32 %v3812_v60, %v1228_v50  ;;  %v1238_v23 = vmul.f32 %v3816_v62, %v1216_v4  ;;  %v4012_v60 = vld [vmem:[%s4304_s4 + $0x8] sm:$0xff] }
 0x917   :  { %v1229_v27 = vmul.f32 %v1215_v6, %v3814_v61  ;;  %v1231_v28 = vmul.f32 %v1227_v7, %v3822_v1  ;;  %v1235_v30 = vmul.f32 %v1227_v7, %v3814_v61  ;;  %v1237_v31 = vmul.f32 %v1215_v6, %v3822_v1  ;;  %v4017_v61 = vld [vmem:[%s4305_s5] sm:$0xff]  ;;  %v4027_v62 = vld [vmem:[%s4305_s5 + $0x8] sm:$0xff] }
 0x918   :  { %v1234_v32 = vsub.f32 %v1230_v13, %v1232_v14  ;;  %v1240_v33 = vadd.f32 %v1238_v23, %v1236_v22 }
 0x919   :  { %v1233_v34 = vsub.f32 %v1229_v27, %v1231_v28  ;;  %v1239_v35 = vadd.f32 %v1237_v31, %v1235_v30 }
 0x91b   :  { %v3401_v36 = vpack.c.bf16 %v1234_v32, %v1233_v34  ;;  %v3405_v37 = vpack.c.bf16 %v1240_v33, %v1239_v35 }
 0x91d   :  { %3402 = vmatprep.subr.bf16.mxu1 %v3401_v36 }
 0x91e   :  { %3404 = vmatpush3.bf16.msra.mxu1 %v3401_v36 }
 0x91f   :  { %3406 = vmatprep.subr.bf16.mxu1 %v3405_v37 }
 0x921   :  { %3127 = vmatmul.mubr.msk.f32.vlgmr.msra.gmra.mrb[16].mxu1 %vm437_vm2, %v4012_v60 }
 0x922   :  { %3408 = vmatpush3.bf16.msra.mxu1 %v3405_v37  ;;  %3133 = vmatprep.mubr.msk.f32.mxu1 %vm437_vm2, %v4017_v61 }
 0x923   :  { %3410 = vmatprep.subr.bf16.mxu1 %v3642_v3 }
 0x929   :  { %3134 = vmatmul.mubr.msk.f32.vlgmr.msra.gmra.mrb[16].mxu1 %vm437_vm2, %v4027_v62 }
 0x92a   :  { %3412 = vmatpush3.bf16.msra.mxu1 %v3642_v3 }
 0x92b   :  { %3414 = vmatprep.subr.bf16.mxu1 %v3647_v5 }
 0x92e   :  { %3416 = vmatpush3.bf16.msra.mxu1 %v3647_v5 }
 0x92f   :  { %3418 = vmatprep.subr.bf16.mxu1 %v3658_v8 }
 0x932   :  { %3420 = vmatpush3.bf16.msra.mxu1 %v3658_v8 }
 0x933   :  { %3422 = vmatprep.subr.bf16.mxu1 %v3674_v12 }
 0x936   :  { %3424 = vmatpush3.bf16.msra.mxu1 %v3674_v12 }
 0x937   :  { %3426 = vmatprep.subr.bf16.mxu1 %v3684_v15 }
 0x93a   :  { %3428 = vmatpush3.bf16.msra.mxu1 %v3684_v15 }
 0x93b   :  { %3430 = vmatprep.subr.bf16.mxu1 %v3694_v18 }
 0x93e   :  { %3432 = vmatpush3.bf16.msra.mxu1 %v3694_v18 }
 0x93f   :  { %3434 = vmatprep.subr.bf16.mxu1 %v3704_v21 }
 0x942   :  { %3436 = vmatpush3.bf16.msra.mxu1 %v3704_v21 }
 0x943   :  { %3438 = vmatprep.subr.bf16.mxu1 %v3714_v24 }
 0x946   :  { %3440 = vmatpush3.bf16.msra.mxu1 %v3714_v24 }
 0x947   :  { %3211 = vmatprep.subr.msk.mxu1 %vm180_vm0, %v3728_v26 }
 0x9fc   :  { %v4048_v1 = vpop.f32.mrb[16].mxu1 }
 0x9fd   :  { %v4050_v38 = vpop.f32.mrb[17].mxu1  ;;  %v3521_v40 = vadd.f32 %v4048_v1, %v3722_v25 }
 0x9fe   :  { %v3522_v39 = vadd.f32 %v4050_v38, %v3663_v9 }
 0xa00   :  { %3168 = vmatprep.mubr.f32.mxu1 %v3522_v39 }
 0xa01   :  { %3169 = vmatmul.mubr.f32.vlgmr.msra.gmra.mrb[18].mxu1 %v3521_v40 }
 0xa02   :  { %3212 = vmatpush3.msk.msra.mxu1 %vm180_vm0, %v3728_v26 }
 0xad4   :  { %v3170_v42 = vpop.f32.mrb[18].mxu1 }
 0xad5   :  { %v1482_v43 = vpop.f32.mrb[19].mxu1  ;;  %v1492_v46 = vmul.f32 0.03125, %v3170_v42 }
 0xad6   :  { %v1491_v44 = vmul.f32 0.03125, %v1482_v43 }
 0xad8   :  { %3173 = vmatprep.mubr.msk.f32.mxu0 %vm173_vm1, %v1491_v44 }
 0xad9   :  { %3174 = vmatmul.mubr.msk.f32.vlgmr.msra.gmra.mrb[6].mxu0 %vm173_vm1, %v1492_v46 }
 0xada   :  { %3444 = vmatpush3.bf16.msra.mxu0 %v3642_v3 }
 0xadb   :  { %3446 = vmatprep.subr.bf16.mxu0 %v3647_v5 }
 0xade   :  { %3448 = vmatpush3.bf16.msra.mxu0 %v3647_v5 }
 0xadf   :  { %3450 = vmatprep.subr.bf16.mxu0 %v3658_v8 }
 0xae2   :  { %3452 = vmatpush3.bf16.msra.mxu0 %v3658_v8 }
 0xae3   :  { %3454 = vmatprep.subr.bf16.mxu0 %v3674_v12 }
 0xae6   :  { %3456 = vmatpush3.bf16.msra.mxu0 %v3674_v12 }
 0xae7   :  { %3458 = vmatprep.subr.bf16.mxu0 %v3684_v15 }
 0xaea   :  { %3460 = vmatpush3.bf16.msra.mxu0 %v3684_v15 }
 0xaeb   :  { %3462 = vmatprep.subr.bf16.mxu0 %v3694_v18 }
 0xaee   :  { %3464 = vmatpush3.bf16.msra.mxu0 %v3694_v18 }
 0xaef   :  { %3466 = vmatprep.subr.bf16.mxu0 %v3704_v21 }
 0xaf2   :  { %3468 = vmatpush3.bf16.msra.mxu0 %v3704_v21 }
 0xaf3   :  { %3470 = vmatprep.subr.bf16.mxu0 %v3714_v24 }
 0xaf6   :  { %3472 = vmatpush3.bf16.msra.mxu0 %v3714_v24 }
 0xaf7   :  { %3478 = vmatprep.subr.bf16.mxu0 %v3642_v3 }
 0xbac   :  { %v3175_v9 = vpop.f32.mrb[6].mxu0 }
 0xbad   :  { %v1575_v25 = vsub.f32 %v3521_v40, %v3175_v9  ;;  %v1565_v26 = vpop.f32.mrb[7].mxu0 }
 0xbae   :  { %v1574_v17 = vsub.f32 %v3522_v39, %v1565_v26 }
 0xbaf   :  { %v1577_v48 = vmul.f32 %v1575_v25, %v1575_v25 }
 0xbb0   :  { %v1576_v20 = vmul.f32 %v1574_v17, %v1574_v17 }
 0xbb2   :  { %3208 = vmatprep.mubr.f32.mxu0 %v1576_v20 }
 0xbb3   :  { %3209 = vmatmul.mubr.f32.vlgmr.msra.gmra.mrb[8].mxu0 %v1577_v48 }
 0xbb4   :  { %3480 = vmatpush3.bf16.msra.mxu0 %v3642_v3 }
 0xbb5   :  { %3482 = vmatprep.subr.bf16.mxu0 %v3647_v5 }
 0xbb8   :  { %3484 = vmatpush3.bf16.msra.mxu0 %v3647_v5 }
 0xbb9   :  { %3486 = vmatprep.subr.bf16.mxu0 %v3658_v8 }
 0xbbc   :  { %3488 = vmatpush3.bf16.msra.mxu0 %v3658_v8 }
 0xbbd   :  { %3490 = vmatprep.subr.bf16.mxu0 %v3674_v12 }
 0xbc0   :  { %3492 = vmatpush3.bf16.msra.mxu0 %v3674_v12 }
 0xbc1   :  { %3494 = vmatprep.subr.bf16.mxu0 %v3684_v15 }
 0xbc4   :  { %3496 = vmatpush3.bf16.msra.mxu0 %v3684_v15 }
 0xbc5   :  { %3498 = vmatprep.subr.bf16.mxu0 %v3694_v18 }
 0xbc8   :  { %3500 = vmatpush3.bf16.msra.mxu0 %v3694_v18 }
 0xbc9   :  { %3502 = vmatprep.subr.bf16.mxu0 %v3704_v21 }
 0xbcc   :  { %3504 = vmatpush3.bf16.msra.mxu0 %v3704_v21 }
 0xbcd   :  { %3506 = vmatprep.subr.bf16.mxu0 %v3714_v24 }
 0xbd0   :  { %3508 = vmatpush3.bf16.msra.mxu0 %v3714_v24  ;;  %v2758_v24 = vld [vmem:[%s4301_s1 + $0x6] ss:$0 sm:$0xff] }
 0xc86   :  { %v3210_v3 = vpop.f32.mrb[8].mxu0 }
 0xc87   :  { %v1644_v5 = vpop.f32.mrb[9].mxu0  ;;  %v1654_v12 = vmul.f32 0.03125, %v3210_v3 }
 0xc88   :  { %v1653_v8 = vmul.f32 0.03125, %v1644_v5 }
 0xc8a   :  { %3213 = vmatprep.mubr.msk.f32.mxu1 %vm173_vm1, %v1653_v8 }
 0xc8b   :  { %3214 = vmatmul.mubr.msk.f32.vlgmr.msra.gmra.mrb[20].mxu1 %vm173_vm1, %v1654_v12 }
 0xc8c   :  { %3220 = vmatprep.mubr.msk.f32.mxu1 %vm437_vm2, %v3781_v41 }
 0xd5e   :  { %v3215_v15 = vpop.f32.mrb[20].mxu1 }
 0xd5f   :  { %v1733_v18 = vadd.f32 1e-05, %v3215_v15  ;;  %v1727_v49 = vpop.f32.mrb[21].mxu1 }
 0xd60   :  { %v1728_v45 = vadd.f32 1e-05, %v1727_v49 }
 0xd61   :  { %3545 = vrsqrt.f32 %v1733_v18 }
 0xd62   :  { %3547 = vrsqrt.f32 %v1728_v45 }
 0xd6b   :  { %v3546_v21 = vpop.eup %3545 }
 0xd6c   :  { %v3548_v19 = vpop.eup %3547  ;;  %v1739_v53 = vmul.f32 %v3546_v21, %v1575_v25 }
 0xd6d   :  { %v1738_v51 = vmul.f32 %v3548_v19, %v1574_v17 }
 0xd6e   :  { %v1745_v55 = vmul.f32 %v2758_v24, %v1739_v53 }
 0xd6f   :  { %v1744_v41 = vmul.f32 %v2758_v24, %v1738_v51 }
 0xd70   :  { %v1751_v56 = vadd.f32 %v2759_v54, %v1745_v55 }
 0xd71   :  { %v1750_v63 = vadd.f32 %v2759_v54, %v1744_v41 }
 0xd73   :  { %v3473_v0 = vpack.c.bf16 %v1751_v56, %v1750_v63 }
 0xd75   :  { %3474 = vmatprep.subr.bf16.mxu1 %v3473_v0 }
 0xd76   :  { %3476 = vmatpush3.bf16.msra.mxu1 %v3473_v0 }
 0xd77   :  { %3261 = vmatprep.subr.msk.mxu1 %vm180_vm0, %v3834_v10 }
 0xd79   :  { %3221 = vmatmul.mubr.msk.f32.vlgmr.msra.gmra.mrb[22].mxu1 %vm437_vm2, %v3794_v57 }
 0xd7a   :  { %3223 = vmatprep.mubr.msk.f32.mxu1 %vm437_vm2, %v3799_v58  ;;  %3262 = vmatpush3.msk.msra.mxu1 %vm180_vm0, %v3834_v10 }
 0xd7b   :  { %3266 = vmatprep.subr.msk.mxu1 %vm180_vm0, %v3843_v11 }
 0xd7d   :  { %3224 = vmatmul.mubr.msk.f32.gmra.mrb[24].mxu1 %vm437_vm2, %v3808_v59 }
 0xe4c   :  { %v4113_v2 = vpop.f32.mrb[22].mxu1 }
 0xe4d   :  { %v4115_v4 = vpop.f32.mrb[23].mxu1  ;;  %v1838_v57 = vmul.f32 %v4113_v2, %v4113_v2 }
 0xe4e   :  { %v1837_v10 = vmul.f32 %v4115_v4, %v4115_v4 }
 0xe50   :  { %v4117_v50 = vpop.f32.mrb[24].mxu1 }
 0xe51   :  { %v1840_v58 = vmul.f32 %v4117_v50, %v4117_v50  ;;  %v4123_v6 = vpop.f32.mrb[25].mxu1 }
 0xe52   :  { %v1839_v59 = vmul.f32 %v4123_v6, %v4123_v6 }
 0xe53   :  { %v1842_v7 = vadd.f32 %v1840_v58, %v1838_v57 }
 0xe54   :  { %v1841_v13 = vadd.f32 %v1839_v59, %v1837_v10 }
 0xe56   :  { %3258 = vmatprep.mubr.f32.mxu0 %v1841_v13 }
 0xe57   :  { %3259 = vmatmul.mubr.f32.vlgmr.msra.gmra.mrb[10].mxu0 %v1842_v7 }
 0xf2a   :  { %v4129_v14 = vpop.f32.mrb[10].mxu0 }
 0xf2b   :  { %v4134_v22 = vsel %vm86_vm3, 1e+30, %v4129_v14  ;;  %v4136_v23 = vpop.f32.mrb[11].mxu0 }
 0xf2c   :  { %1921 = vst.msk [vmem:[#allocation2 + $0x8] sm:$0xff] %vm173_vm1, %v4134_v22  ;;  %1920 = vst.msk [vmem:[#allocation2] sm:$0xff] %vm173_vm1, %v4136_v23 }
 0xf33   :  { %v2764_v27 = vld [vmem:[#allocation2] ss:$0 sm:$0xff]  ;;  %v2765_v28 = vld [vmem:[#allocation2 + $0x1] ss:$0 sm:$0xff]  ;;  %v2766_v30 = vld [vmem:[#allocation2 + $0x2] ss:$0 sm:$0xff] }
 0xf34   :  { %vm1927_vm12 = vcmp.le.f32.partialorder %v2764_v27, %v4136_v23  ;;  %vm1928_vm13 = vcmp.le.f32.partialorder %v2764_v27, %v4134_v22  ;;  %vm1938_vm14 = vcmp.le.f32.partialorder %v2765_v28, %v4136_v23  ;;  %vm1939_vm15 = vcmp.le.f32.partialorder %v2765_v28, %v4134_v22  ;;  %v2767_v33 = vld [vmem:[#allocation2 + $0x3] ss:$0 sm:$0xff]  ;;  %v2768_v36 = vld [vmem:[#allocation2 + $0x4] ss:$0 sm:$0xff]  ;;  %v2769_v43 = vld [vmem:[#allocation2 + $0x5] ss:$0 sm:$0xff] }
 0xf35   :  { %v1929_v31 = vsel %vm1927_vm12, 1.0, %v3569_v29  ;;  %v1930_v32 = vsel %vm1928_vm13, 1.0, %v3569_v29  ;;  %v1940_v34 = vsel %vm1938_vm14, 1.0, %v3569_v29  ;;  %v1941_v35 = vsel %vm1939_vm15, 1.0, %v3569_v29  ;;  %v2770_v26 = vld [vmem:[#allocation2 + $0x6] ss:$0 sm:$0xff] }
 0xf36   :  { %vm1949_vm4 = vcmp.le.f32.partialorder %v2766_v30, %v4136_v23  ;;  %vm1950_vm5 = vcmp.le.f32.partialorder %v2766_v30, %v4134_v22  ;;  %v1942_v37 = vadd.f32 %v1940_v34, %v1929_v31  ;;  %v1943_v39 = vadd.f32 %v1941_v35, %v1930_v32  ;;  %v2771_v5 = vld [vmem:[#allocation2 + $0x7] ss:$0 sm:$0xff]  ;;  %v2772_v15 = vld [vmem:[#allocation2 + $0x8] ss:$0 sm:$0xff] }
 0xf37   :  { %v1951_v40 = vsel %vm1949_vm4, 1.0, %v3569_v29  ;;  %v1952_v42 = vsel %vm1950_vm5, 1.0, %v3569_v29  ;;  %vm1960_vm6 = vcmp.le.f32.partialorder %v2767_v33, %v4136_v23  ;;  %vm1961_vm7 = vcmp.le.f32.partialorder %v2767_v33, %v4134_v22 }
 0xf38   :  { %v1953_v44 = vadd.f32 %v1951_v40, %v1942_v37  ;;  %v1954_v46 = vadd.f32 %v1952_v42, %v1943_v39  ;;  %vm1971_vm8 = vcmp.le.f32.partialorder %v2768_v36, %v4136_v23  ;;  %vm1972_vm9 = vcmp.le.f32.partialorder %v2768_v36, %v4134_v22 }
 0xf39   :  { %v1962_v9 = vsel %vm1960_vm6, 1.0, %v3569_v29  ;;  %v1963_v25 = vsel %vm1961_vm7, 1.0, %v3569_v29  ;;  %vm1982_vm10 = vcmp.le.f32.partialorder %v2769_v43, %v4136_v23  ;;  %vm1983_vm11 = vcmp.le.f32.partialorder %v2769_v43, %v4134_v22 }
 0xf3a   :  { %v1964_v17 = vadd.f32 %v1962_v9, %v1953_v44  ;;  %v1965_v20 = vadd.f32 %v1963_v25, %v1954_v46  ;;  %v1973_v48 = vsel %vm1971_vm8, 1.0, %v3569_v29  ;;  %v1974_v3 = vsel %vm1972_vm9, 1.0, %v3569_v29 }
 0xf3b   :  { %vm1993_vm12 = vcmp.le.f32.partialorder %v2770_v26, %v4136_v23  ;;  %vm1994_vm13 = vcmp.le.f32.partialorder %v2770_v26, %v4134_v22  ;;  %v1984_v18 = vsel %vm1982_vm10, 1.0, %v3569_v29  ;;  %v1985_v49 = vsel %vm1983_vm11, 1.0, %v3569_v29 }
 0xf3c   :  { %v1975_v8 = vadd.f32 %v1973_v48, %v1964_v17  ;;  %v1976_v12 = vadd.f32 %v1974_v3, %v1965_v20  ;;  %vm2004_vm14 = vcmp.le.f32.partialorder %v2771_v5, %v4136_v23  ;;  %vm2005_vm15 = vcmp.le.f32.partialorder %v2771_v5, %v4134_v22 }
 0xf3d   :  { %v1995_v24 = vsel %vm1993_vm12, 1.0, %v3569_v29  ;;  %v1996_v19 = vsel %vm1994_vm13, 1.0, %v3569_v29  ;;  %vm2016_vm4 = vcmp.le.f32.partialorder %v2772_v15, %v4134_v22  ;;  %vm2015_vm5 = vcmp.le.f32.partialorder %v2772_v15, %v4136_v23 }
 0xf3e   :  { %v1986_v45 = vadd.f32 %v1984_v18, %v1975_v8  ;;  %v1987_v21 = vadd.f32 %v1985_v49, %v1976_v12  ;;  %v2006_v51 = vsel %vm2004_vm14, 1.0, %v3569_v29  ;;  %v2007_v55 = vsel %vm2005_vm15, 1.0, %v3569_v29 }
 0xf3f   :  { %v2018_v63 = vsel %vm2016_vm4, 1.0, %v3569_v29  ;;  %v2017_v0 = vsel %vm2015_vm5, 1.0, %v3569_v29 }
 0xf40   :  { %v1997_v53 = vadd.f32 %v1995_v24, %v1986_v45  ;;  %v1998_v54 = vadd.f32 %v1996_v19, %v1987_v21 }
 0xf42   :  { %v2008_v41 = vadd.f32 %v2006_v51, %v1997_v53  ;;  %v2009_v56 = vadd.f32 %v2007_v55, %v1998_v54 }
 0xf44   :  { %v2019_v57 = vadd.f32 %v2017_v0, %v2008_v41  ;;  %v2020_v58 = vadd.f32 %v2018_v63, %v2009_v56 }
 0xf46   :  { %vm2021_vm6 = vcmp.ge.f32.partialorder %v2019_v57, 5.0  ;;  %vm2022_vm7 = vcmp.ge.f32.partialorder %v2020_v58, 5.0 }
 0xf47   :  { %v2023_v10 = vsel %vm2021_vm6, %v4136_v23, 1e+30  ;;  %v2024_v59 = vsel %vm2022_vm7, %v4134_v22, 1e+30 }
 0xf48   :  { %v2025_v7 = vsel %vm173_vm1, %v2023_v10, inf  ;;  %v2026_v13 = vsel %vm173_vm1, %v2024_v59, inf }
 0xf49   :  { %v2027_v27 = vmin.f32 %v2025_v7, %v2026_v13 }
 0xf4b   :  { %v2028_v28 = vrot.slane %v2027_v27, 4 }
 0xf4d   :  { %v2029_v30 = vmin.f32 %v2027_v27, %v2028_v28 }
 0xf4f   :  { %v2030_v31 = vrot.slane %v2029_v30, 2 }
 0xf51   :  { %v2031_v32 = vmin.f32 %v2029_v30, %v2030_v31 }
 0xf53   :  { %v2032_v33 = vrot.slane %v2031_v32, 1 }
 0xf55   :  { %v2033_v34 = vmin.f32 %v2031_v32, %v2032_v33 }
 0xf57   :  { %v2034_v35 = vadd.f32 1e-06, %v2033_v34 }
 0xf59   :  { %3549 = vrcp.f32 %v2034_v35  ;;  %v2378_v35 = vstv %s2749_s7 }
 0xf63   :  { %v3550_v36 = vpop.eup %3549 }
 0xf64   :  { %v4183_v37 = vmul.f32 %v3550_v36, %v4136_v23  ;;  %v2037_v39 = vmul.f32 %v3550_v36, %v4129_v14  ;;  %v2395_v36 = vstv %s2750_s6 }
 0xf66   :  { %3263 = vmatprep.mubr.msk.f32.mxu1 %vm173_vm1, %v4183_v37  ;;  %v4190_v22 = vsel %vm86_vm3, 1e+30, %v2037_v39 }
 0xf67   :  { %3264 = vmatmul.mubr.msk.f32.vlgmr.msra.gmra.mrb[26].mxu1 %vm173_vm1, %v4190_v22 }
 0xf68   :  { %3268 = vmatprep.mubr.msk.f32.mxu1 %vm173_vm1, %v4183_v37  ;;  %3267 = vmatpush3.msk.msra.mxu1 %vm180_vm0, %v3843_v11 }
 0xf69   :  { %3510 = vmatprep.subr.bf16.mxu1 %v3927_v47 }
 0xf6b   :  { %3269 = vmatmul.mubr.msk.f32.vlgmr.msra.gmra.mrb[28].mxu1 %vm173_vm1, %v4190_v22 }
 0xf6c   :  { %3512 = vmatpush3.bf16.msra.mxu1 %v3927_v47 }
 0xf6d   :  { %3278 = vmatprep.subr.msk.mxu1 %vm180_vm0, %v4205_v16 }
0x103a   :  { %v3265_v14 = vpop.f32.mrb[26].mxu1 }
0x103b   :  { %2197 = vst.msk [vmem:[#allocation3 + $0x8] sm:$0xff] %vm437_vm2, %v3265_v14  ;;  %v2112_v23 = vpop.f32.mrb[27].mxu1 }
0x103c   :  { %2196 = vst.msk [vmem:[#allocation3] sm:$0xff] %vm437_vm2, %v2112_v23 }
0x103e   :  { %v4211_v11 = vpop.f32.mrb[28].mxu1 }
0x103f   :  { %v2187_v40 = vpop.f32.mrb[29].mxu1 }
0x1042   :  { %v2787_v24 = vld [vmem:[#allocation3 + $0x8] ss:$0 sm:$0xff] }
0x1043   :  { %v2779_v42 = vld [vmem:[#allocation3] ss:$0 sm:$0xff]  ;;  %v2780_v43 = vld [vmem:[#allocation3 + $0x1] ss:$0 sm:$0xff]  ;;  %v2781_v47 = vld [vmem:[#allocation3 + $0x2] ss:$0 sm:$0xff] }
0x1044   :  { %vm2203_vm3 = vcmp.le.f32.partialorder %v2779_v42, %v2187_v40  ;;  %vm2214_vm8 = vcmp.le.f32.partialorder %v2780_v43, %v2187_v40  ;;  %v2782_v44 = vld [vmem:[#allocation3 + $0x3] ss:$0 sm:$0xff]  ;;  %v2783_v25 = vld [vmem:[#allocation3 + $0x4] ss:$0 sm:$0xff]  ;;  %vm2225_vm9 = vcmp.le.f32.partialorder %v2781_v47, %v2187_v40  ;;  %vm2204_vm11 = vcmp.le.f32.partialorder %v2779_v42, %v4211_v11  ;;  %v2784_v20 = vld [vmem:[#allocation3 + $0x5] ss:$0 sm:$0xff] }
0x1045   :  { %v2205_v46 = vsel %vm2203_vm3, 1.0, %v3569_v29  ;;  %v2216_v9 = vsel %vm2214_vm8, 1.0, %v3569_v29  ;;  %vm2236_vm10 = vcmp.le.f32.partialorder %v2782_v44, %v2187_v40  ;;  %vm2215_vm12 = vcmp.le.f32.partialorder %v2780_v43, %v4211_v11  ;;  %v2785_v5 = vld [vmem:[#allocation3 + $0x6] ss:$0 sm:$0xff]  ;;  %v2786_v49 = vld [vmem:[#allocation3 + $0x7] ss:$0 sm:$0xff] }
0x1046   :  { %v2218_v26 = vadd.f32 %v2216_v9, %v2205_v46  ;;  %v2227_v17 = vsel %vm2225_vm9, 1.0, %v3569_v29  ;;  %vm2247_vm13 = vcmp.le.f32.partialorder %v2783_v25, %v2187_v40  ;;  %v2238_v3 = vsel %vm2236_vm10, 1.0, %v3569_v29 }
0x1047   :  { %v2206_v8 = vsel %vm2204_vm11, 1.0, %v3569_v29  ;;  %v2217_v12 = vsel %vm2215_vm12, 1.0, %v3569_v29  ;;  %vm2258_vm14 = vcmp.le.f32.partialorder %v2784_v20, %v2187_v40  ;;  %vm2226_vm15 = vcmp.le.f32.partialorder %v2781_v47, %v4211_v11 }
0x1048   :  { %v2229_v48 = vadd.f32 %v2227_v17, %v2218_v26  ;;  %v2249_v18 = vsel %vm2247_vm13, 1.0, %v3569_v29  ;;  %vm2269_vm4 = vcmp.le.f32.partialorder %v2785_v5, %v2187_v40  ;;  %vm2237_vm5 = vcmp.le.f32.partialorder %v2782_v44, %v4211_v11 }
0x1049   :  { %v2260_v21 = vsel %vm2258_vm14, 1.0, %v3569_v29  ;;  %v2219_v19 = vadd.f32 %v2217_v12, %v2206_v8  ;;  %v2228_v53 = vsel %vm2226_vm15, 1.0, %v3569_v29  ;;  %vm2280_vm6 = vcmp.le.f32.partialorder %v2786_v49, %v2187_v40 }
0x104a   :  { %v2240_v15 = vadd.f32 %v2238_v3, %v2229_v48  ;;  %vm2248_vm7 = vcmp.le.f32.partialorder %v2783_v25, %v4211_v11  ;;  %v2271_v51 = vsel %vm2269_vm4, 1.0, %v3569_v29  ;;  %v2239_v41 = vsel %vm2237_vm5, 1.0, %v3569_v29 }
0x104b   :  { %v2230_v55 = vadd.f32 %v2228_v53, %v2219_v19  ;;  %vm2291_vm3 = vcmp.le.f32.partialorder %v2787_v24, %v2187_v40  ;;  %vm2259_vm8 = vcmp.le.f32.partialorder %v2784_v20, %v4211_v11  ;;  %v2282_v63 = vsel %vm2280_vm6, 1.0, %v3569_v29 }
0x104c   :  { %v2251_v45 = vadd.f32 %v2249_v18, %v2240_v15  ;;  %v2250_v57 = vsel %vm2248_vm7, 1.0, %v3569_v29  ;;  %vm2270_vm9 = vcmp.le.f32.partialorder %v2785_v5, %v4211_v11  ;;  %v2293_v10 = vsel %vm2291_vm3, 1.0, %v3569_v29 }
0x104d   :  { %v2241_v0 = vadd.f32 %v2239_v41, %v2230_v55  ;;  %v2261_v7 = vsel %vm2259_vm8, 1.0, %v3569_v29  ;;  %vm2281_vm10 = vcmp.le.f32.partialorder %v2786_v49, %v4211_v11  ;;  %v2272_v28 = vsel %vm2270_vm9, 1.0, %v3569_v29 }
0x104e   :  { %v2262_v54 = vadd.f32 %v2260_v21, %v2251_v45  ;;  %vm2292_vm11 = vcmp.le.f32.partialorder %v2787_v24, %v4211_v11  ;;  %v2283_v31 = vsel %vm2281_vm10, 1.0, %v3569_v29 }
0x104f   :  { %v2252_v59 = vadd.f32 %v2250_v57, %v2241_v0  ;;  %v2294_v33 = vsel %vm2292_vm11, 1.0, %v3569_v29 }
0x1050   :  { %v2273_v56 = vadd.f32 %v2271_v51, %v2262_v54  ;;  %v2793_v54 = vld [vmem:[%s4301_s1 + $0xa] ss:$0 sm:$0xff] }
0x1051   :  { %v2263_v27 = vadd.f32 %v2261_v7, %v2252_v59 }
0x1052   :  { %v2284_v58 = vadd.f32 %v2282_v63, %v2273_v56 }
0x1053   :  { %v2274_v30 = vadd.f32 %v2272_v28, %v2263_v27 }
0x1054   :  { %v2295_v13 = vadd.f32 %v2293_v10, %v2284_v58 }
0x1055   :  { %v2285_v32 = vadd.f32 %v2283_v31, %v2274_v30 }
0x1056   :  { %3275 = vmatprep.mubr.msk.f32.mxu1 %vm437_vm2, %v2295_v13 }
0x1057   :  { %v2296_v34 = vadd.f32 %v2294_v33, %v2285_v32 }
0x1059   :  { %3276 = vmatmul.mubr.msk.f32.vlgmr.msra.gmra.mrb[30].mxu1 %vm437_vm2, %v2296_v34 }
0x105a   :  { %3279 = vmatpush3.msk.msra.mxu1 %vm180_vm0, %v4205_v16 }
0x112c   :  { %v3277_v39 = vpop.f32.mrb[30].mxu1 }
0x112d   :  { %vm2380_vm12 = vcmp.ge.f32.partialorder %v3277_v39, %v2378_v35  ;;  %vm2397_vm13 = vcmp.ge.f32.partialorder %v3277_v39, %v2395_v36  ;;  %v2369_v14 = vpop.f32.mrb[31].mxu1 }
0x112e   :  { %v2399_v23 = vsel %vm2397_vm13, %v4190_v22, 1e+30  ;;  %vm2379_vm14 = vcmp.ge.f32.partialorder %v2369_v14, %v2378_v35  ;;  %vm2396_vm15 = vcmp.ge.f32.partialorder %v2369_v14, %v2395_v36  ;;  %v2382_v11 = vsel %vm2380_vm12, %v4190_v22, 1e+30 }
0x112f   :  { %v2398_v40 = vsel %vm2396_vm15, %v4183_v37, 1e+30  ;;  %v2381_v42 = vsel %vm2379_vm14, %v4183_v37, 1e+30  ;;  %v2384_v16 = vsel %vm173_vm1, %v2382_v11, inf  ;;  %v2401_v43 = vsel %vm173_vm1, %v2399_v23, inf }
0x1130   :  { %v2383_v47 = vsel %vm173_vm1, %v2381_v42, inf  ;;  %v2400_v44 = vsel %vm173_vm1, %v2398_v40, inf }
0x1131   :  { %v2385_v46 = vmin.f32 %v2383_v47, %v2384_v16  ;;  %v2402_v9 = vmin.f32 %v2400_v44, %v2401_v43 }
0x1133   :  { %2386 = vmin.xlane.f32.xlu1 %v2385_v46 }
0x1137   :  { %2403 = vmin.xlane.f32.xlu1 %v2402_v9 }
0x11c0   :  { %v2387_v25 = vpop.xlane.xlu1 %2386 }
0x11c1   :  { %v2388_v26 = vrot.slane %v2387_v25, 4 }
0x11c3   :  { %v2389_v17 = vmin.f32 %v2387_v25, %v2388_v26 }
0x11c4   :  { %v2404_v20 = vpop.xlane.xlu1 %2403 }
0x11c5   :  { %v2390_v48 = vrot.slane %v2389_v17, 2  ;;  %v2405_v3 = vrot.slane %v2404_v20, 4 }
0x11c7   :  { %v2406_v5 = vmin.f32 %v2404_v20, %v2405_v3  ;;  %v2391_v8 = vmin.f32 %v2389_v17, %v2390_v48 }
0x11c9   :  { %v2407_v12 = vrot.slane %v2406_v5, 2  ;;  %v2392_v15 = vrot.slane %v2391_v8, 1 }
0x11cb   :  { %v2408_v18 = vmin.f32 %v2406_v5, %v2407_v12  ;;  %v2393_v49 = vmin.f32 %v2391_v8, %v2392_v15 }
0x11cd   :  { %3533 = vpush %v2393_v49  ;;  %v2409_v45 = vrot.slane %v2408_v18, 1 }
0x11cf   :  { %v2410_v21 = vmin.f32 %v2408_v18, %v2409_v45 }
0x11d1   :  { %3535 = vpush %v2410_v21 }
0x11fe   :  { %s3534_s19 = spop %3533 }
0x1202   :  { %s3536_s20 = spop %3535 }
0x1203   :  { %s2412_s21 = ssub.f32 %s3536_s20, %s3534_s19 }
0x1205   :  { %s2413_s22 = smul.f32 %s2751_s18, %s2412_s21 }
0x1207   :  { %s2414_s23 = sadd.f32 %s3534_s19, %s2413_s22 }
0x1209   :  { %v2415_v24 = vstv %s2414_s23 }
0x120a   :  { %vm2417_vm0 = vcmp.lt.f32.partialorder %v4190_v22, %v2415_v24  ;;  %vm2416_vm4 = vcmp.lt.f32.partialorder %v4183_v37, %v2415_v24  ;;  %v2795_v22 = vld [vmem:[%s4301_s1 + $0xb] ss:$0 sm:$0xff]  ;;  %v2794_v37 = vld [vmem:[%s4301_s1 + $0x8] ss:$0 sm:$0xff] }
0x120b   :  { %v2418_v19 = vsel %vm2416_vm4, 1.0, %v3569_v29  ;;  %v2419_v53 = vsel %vm2417_vm0, 1.0, %v3569_v29  ;;  %v2796_v29 = vld [vmem:[%s4301_s1 + $0x9] ss:$0 sm:$0xff] }
0x120c   :  { %3280 = vmatprep.mubr.msk.f32.mxu1 %vm173_vm1, %v2418_v19 }
0x120d   :  { %3281 = vmatmul.mubr.msk.f32.vlgmr.msra.gmra.mrb[32].mxu1 %vm173_vm1, %v2419_v53 }
0x120e   :  { %3287 = vmatprep.mubr.msk.f32.mxu1 %vm437_vm2, %v3985_v52 }
0x12e0   :  { %v3282_v51 = vpop.f32.mrb[32].mxu1 }
0x12e1   :  { %v2506_v55 = vmul.f32 %v3282_v51, %v2793_v54  ;;  %v2518_v41 = vmul.f32 %v3282_v51, %v2795_v22  ;;  %v2492_v52 = vpop.f32.mrb[33].mxu1 }
0x12e2   :  { %v2505_v56 = vmul.f32 %v2793_v54, %v2492_v52  ;;  %v2517_v63 = vmul.f32 %v2795_v22, %v2492_v52 }
0x12e3   :  { %v2512_v0 = vadd.f32 %v2794_v37, %v2506_v55  ;;  %v2524_v57 = vadd.f32 %v2796_v29, %v2518_v41 }
0x12e4   :  { %v2511_v58 = vadd.f32 %v2794_v37, %v2505_v56  ;;  %v2523_v10 = vadd.f32 %v2796_v29, %v2517_v63 }
0x12e5   :  { %v2526_v59 = vmul.f32 %v4113_v2, %v2512_v0  ;;  %v2528_v7 = vmul.f32 %v4117_v50, %v2524_v57  ;;  %v2532_v13 = vmul.f32 %v4113_v2, %v2524_v57  ;;  %v2534_v27 = vmul.f32 %v4117_v50, %v2512_v0  ;;  %v3552_v2 = vld [vmem:[%s4300_s0 + $0x8] sm:$0xff]  ;;  %v3553_v50 = vld [vmem:[%s4300_s0] sm:$0xff] }
0x12e6   :  { %v2525_v28 = vmul.f32 %v2511_v58, %v4115_v4  ;;  %v2527_v30 = vmul.f32 %v2523_v10, %v4123_v6  ;;  %v2531_v31 = vmul.f32 %v2523_v10, %v4115_v4  ;;  %v2533_v32 = vmul.f32 %v2511_v58, %v4123_v6 }
0x12e7   :  { %v2530_v33 = vsub.f32 %v2526_v59, %v2528_v7  ;;  %v2536_v34 = vadd.f32 %v2534_v27, %v2532_v13  ;;  %v1323_v4 = vadd.f32 nan, %v3552_v2  ;;  %v1322_v6 = vadd.f32 nan, %v3553_v50 }
0x12e8   :  { %v2529_v35 = vsub.f32 %v2525_v28, %v2527_v30  ;;  %v2535_v36 = vadd.f32 %v2533_v32, %v2531_v31 }
0x12e9   :  { %v1406_v23 = vadd.f32 %v4048_v1, %v1323_v4 }
0x12ea   :  { %v3513_v39 = vpack.c.bf16 %v2530_v33, %v2529_v35  ;;  %v3517_v14 = vpack.c.bf16 %v2536_v34, %v2535_v36 }
0x12ec   :  { %3514 = vmatprep.subr.bf16.mxu1 %v3513_v39 }
0x12ed   :  { %3516 = vmatpush3.bf16.msra.mxu1 %v3513_v39 }
0x12ee   :  { %3518 = vmatprep.subr.bf16.mxu1 %v3517_v14 }
0x12f0   :  { %3288 = vmatmul.mubr.msk.f32.vlgmr.msra.gmra.mrb[34].mxu1 %vm437_vm2, %v4012_v60  ;;  %v1405_v60 = vadd.f32 %v4050_v38, %v1322_v6 }
0x12f1   :  { %3520 = vmatpush3.bf16.msra.mxu1 %v3517_v14  ;;  %3294 = vmatprep.mubr.msk.f32.mxu1 %vm437_vm2, %v4017_v61 }
0x12f8   :  { %3295 = vmatmul.mubr.msk.f32.vlgmr.msra.gmra.mrb[34].mxu1 %vm437_vm2, %v4027_v62 }
0x13cb   :  { %v3296_v11 = vpop.f32.mrb[34].mxu1 }
0x13cc   :  { %v3523_v40 = vadd.f32 %v3296_v11, %v1406_v23  ;;  %v2680_v61 = vpop.f32.mrb[35].mxu1 }
0x13cd   :  { %v3524_v42 = vadd.f32 %v2680_v61, %v1405_v60 }
0x13ce   :  { %2692 = vst [vmem:[%s4311_s11 + $0x8] sm:$0xff] %v3523_v40 }
0x13cf   :  { %2691 = vst [vmem:[%s4311_s11] sm:$0xff] %v3524_v42 }
0x13d0   :  { %2697 = vsyncpa [#allocation5], 1 }

</bundles_post_ra>
